<compile_context>
chip_gen: v5e
topology: v5e:2x2
jax: 0.10.0
libtpu: 0.0.40
codegen_flags: <defaults>
</compile_context>

<pallas_src>
import jax
import jax.numpy as jnp
from jax import lax
from jax.experimental import pallas as pl
from jax.experimental.pallas import tpu as pltpu


def self_attn_kernel(x_ref, xq_ref, wq_ref, bq_ref, wk_ref, bk_ref,
                     wv_ref, bv_ref, gamma_ref, out_ref, attn_ref):
    # x_ref:  (1, C, N)   full pixel row of this batch (for keys / values)
    # xq_ref: (1, C, Tq)  query-pixel slice of the same row
    # wq/wk: (C8, C), bq/bk: (C8, 1); wv: (C, C), bv: (C, 1); gamma: (1, 1)
    x = x_ref[0]          # (C, N)
    xq = xq_ref[0]        # (C, Tq)

    # 1x1 convs == channel matmuls, pixel axis stays on lanes (lane-dense).
    q = jnp.dot(wq_ref[...], xq, preferred_element_type=jnp.float32) + bq_ref[...]   # (C8, Tq)
    k = jnp.dot(wk_ref[...], x, preferred_element_type=jnp.float32) + bk_ref[...]    # (C8, N)
    v = jnp.dot(wv_ref[...], x, preferred_element_type=jnp.float32) + bv_ref[...]    # (C, N)

    # energy[i, j] = sum_c q[c, i] * k[c, j]  -> (Tq, N), keys on lanes.
    energy = lax.dot_general(q, k, (((0,), (0,)), ((), ())),
                             preferred_element_type=jnp.float32)

    # Softmax over keys (last / lane axis).
    m = jnp.max(energy, axis=-1, keepdims=True)
    e = jnp.exp(energy - m)
    denom = jnp.sum(e, axis=-1, keepdims=True)
    attn = e * pl.reciprocal(denom, approx=True)                      # (Tq, N)
    attn_ref[0] = attn.astype(attn_ref.dtype)

    # out[c, i] = sum_j v[c, j] * attn[i, j]  -> (C, Tq), pixels on lanes.
    outv = lax.dot_general(v, attn, (((1,), (1,)), ((), ())),
                           preferred_element_type=jnp.float32)
    out_ref[0] = (gamma_ref[...] * outv + xq).astype(out_ref.dtype)


def self_attn(x, params, *, tile_q=None):
    """x: (B, C, H, W) NCHW. Returns (out (B,C,H,W), attention (B, N, N))."""
    B, C, H, W = x.shape
    N = H * W
    C8 = params["w_query"].shape[0]

    # Contiguous view of NCHW — no transpose, no extra HBM traffic.
    x_flat = x.reshape(B, C, N)

    if tile_q is None:
        tile_q = N                      # fall back: whole pixel row per step
        for cand in (2048, 1024, 512, 256, 128):
            if N % cand == 0:
                tile_q = cand
                break
    assert N % tile_q == 0, "H*W must be divisible by tile_q"
    assert tile_q == N or tile_q % 128 == 0

    w_q = params["w_query"]
    b_q = params["b_query"].reshape(C8, 1)
    w_k = params["w_key"]
    b_k = params["b_key"].reshape(C8, 1)
    w_v = params["w_value"]
    b_v = params["b_value"].reshape(C, 1)
    gamma = params["gamma"].reshape(1, 1)

    grid = (B, N // tile_q)
    out_flat, attn = pl.pallas_call(
        self_attn_kernel,
        out_shape=(
            jax.ShapeDtypeStruct((B, C, N), x.dtype),
            jax.ShapeDtypeStruct((B, N, N), jnp.float32),
        ),
        grid_spec=pltpu.PrefetchScalarGridSpec(
            num_scalar_prefetch=0,
            grid=grid,
            in_specs=[
                pl.BlockSpec((1, C, N), lambda b, qi: (b, 0, 0)),        # x (keys/values)
                pl.BlockSpec((1, C, tile_q), lambda b, qi: (b, 0, qi)),  # x query slice
                pl.BlockSpec((C8, C), lambda b, qi: (0, 0)),             # w_query
                pl.BlockSpec((C8, 1), lambda b, qi: (0, 0)),             # b_query
                pl.BlockSpec((C8, C), lambda b, qi: (0, 0)),             # w_key
                pl.BlockSpec((C8, 1), lambda b, qi: (0, 0)),             # b_key
                pl.BlockSpec((C, C), lambda b, qi: (0, 0)),              # w_value
                pl.BlockSpec((C, 1), lambda b, qi: (0, 0)),              # b_value
                pl.BlockSpec((1, 1), lambda b, qi: (0, 0)),              # gamma
            ],
            out_specs=(
                pl.BlockSpec((1, C, tile_q), lambda b, qi: (b, 0, qi)),
                pl.BlockSpec((1, tile_q, N), lambda b, qi: (b, qi, 0)),
            ),
        ),
        compiler_params=pltpu.CompilerParams(
            dimension_semantics=("parallel", "parallel"),
            vmem_limit_bytes=32 * 1024 * 1024,
        ),
    )(x_flat, x_flat, w_q, b_q, w_k, b_k, w_v, b_v, gamma)

    return out_flat.reshape(B, C, H, W), attn


def reference(x, params):
    """Pure-JAX reference mirroring the PyTorch forward."""
    B, C, H, W = x.shape
    N = H * W
    xf = x.reshape(B, C, N)
    hp = lax.Precision.HIGHEST
    q = jnp.einsum("oc,bcn->bon", params["w_query"], xf, precision=hp) \
        + params["b_query"][None, :, None]
    k = jnp.einsum("oc,bcn->bon", params["w_key"], xf, precision=hp) \
        + params["b_key"][None, :, None]
    v = jnp.einsum("oc,bcn->bon", params["w_value"], xf, precision=hp) \
        + params["b_value"][None, :, None]
    energy = jnp.einsum("bci,bcj->bij", q, k, precision=hp)      # (B, N, N)
    attn = jax.nn.softmax(energy, axis=-1)
    out = jnp.einsum("bcj,bij->bci", v, attn, precision=hp)      # (B, C, N)
    out = params["gamma"][0] * out + xf
    return out.reshape(B, C, H, W), attn


def make_params(key, C):
    C8 = C // 8
    ks = jax.random.split(key, 7)
    return {
        # Conv2d 1x1 weights stored as (C_out, C_in), matching PyTorch semantics.
        "w_query": 0.1 * jax.random.normal(ks[0], (C8, C), jnp.float32),
        "b_query": 0.1 * jax.random.normal(ks[1], (C8,), jnp.float32),
        "w_key":   0.1 * jax.random.normal(ks[2], (C8, C), jnp.float32),
        "b_key":   0.1 * jax.random.normal(ks[3], (C8,), jnp.float32),
        "w_value": 0.1 * jax.random.normal(ks[4], (C, C), jnp.float32),
        "b_value": 0.1 * jax.random.normal(ks[5], (C,), jnp.float32),
        # gamma is a learnable scalar (initialized to 0 in PyTorch); use a nonzero
        # value so the attention path actually contributes to the output in the test.
        "gamma": 0.5 + 0.1 * jax.random.normal(ks[6], (1,), jnp.float32),
    }


if __name__ == "__main__":
    key = jax.random.PRNGKey(0)
    kx, kp = jax.random.split(key)

    # in_dim must be divisible by 8 (query/key channels = in_dim // 8).
    B, C, H, W = 2, 32, 16, 16
    x = jax.random.normal(kx, (B, C, H, W), jnp.float32)
    params = make_params(kp, C)

    out, attn = self_attn(x, params)
    out = jax.block_until_ready(out)
    attn = jax.block_until_ready(attn)

    ref_out, ref_attn = reference(x, params)
    assert out.shape == (B, C, H, W)
    assert attn.shape == (B, H * W, H * W)
    assert jnp.allclose(attn, ref_attn, atol=1e-3, rtol=1e-2), "attention mismatch"
    assert jnp.allclose(out, ref_out, atol=1e-2, rtol=1e-2), "output mismatch"

    print("KERNEL_OK")
</pallas_src>

<mosaic_0001>
module attributes {stable_mosaic.version = 11 : i64} {
  func.func @self_attn_kernel(%arg0: i32, %arg1: i32, %arg2: memref<1x32x256xf32, #tpu.memory_space<vmem>>, %arg3: memref<1x32x256xf32, #tpu.memory_space<vmem>>, %arg4: memref<4x32xf32, #tpu.memory_space<vmem>>, %arg5: memref<4x1xf32, #tpu.memory_space<vmem>>, %arg6: memref<4x32xf32, #tpu.memory_space<vmem>>, %arg7: memref<4x1xf32, #tpu.memory_space<vmem>>, %arg8: memref<32x32xf32, #tpu.memory_space<vmem>>, %arg9: memref<32x1xf32, #tpu.memory_space<vmem>>, %arg10: memref<1x1xf32, #tpu.memory_space<vmem>>, %arg11: memref<1x32x256xf32, #tpu.memory_space<vmem>>, %arg12: memref<1x256x256xf32, #tpu.memory_space<vmem>>) attributes {dimension_semantics = [#tpu.dimension_semantics<parallel>, #tpu.dimension_semantics<parallel>], iteration_bounds = array<i64: 2, 1>, scalar_prefetch = 0 : i64, scratch_operands = 0 : i64, tpu.core_type = #tpu.core_type<tc>, window_params = [{transform_indices = @transform_0, window_bounds = array<i64: 1, 32, 256>}, {transform_indices = @transform_1, window_bounds = array<i64: 1, 32, 256>}, {pipeline_mode = #tpu.pipeline_mode<synchronous>, transform_indices = @transform_2, window_bounds = array<i64: 4, 32>}, {pipeline_mode = #tpu.pipeline_mode<synchronous>, transform_indices = @transform_3, window_bounds = array<i64: 4, 1>}, {pipeline_mode = #tpu.pipeline_mode<synchronous>, transform_indices = @transform_4, window_bounds = array<i64: 4, 32>}, {pipeline_mode = #tpu.pipeline_mode<synchronous>, transform_indices = @transform_5, window_bounds = array<i64: 4, 1>}, {pipeline_mode = #tpu.pipeline_mode<synchronous>, transform_indices = @transform_6, window_bounds = array<i64: 32, 32>}, {pipeline_mode = #tpu.pipeline_mode<synchronous>, transform_indices = @transform_7, window_bounds = array<i64: 32, 1>}, {pipeline_mode = #tpu.pipeline_mode<synchronous>, transform_indices = @transform_8, window_bounds = array<i64: 1, 1>}, {transform_indices = @transform_9, window_bounds = array<i64: 1, 32, 256>}, {transform_indices = @transform_10, window_bounds = array<i64: 1, 256, 256>}]} {
    %c0 = arith.constant 0 : index
    %c0_0 = arith.constant 0 : index
    %c0_1 = arith.constant 0 : index
    %0 = vector.load %arg2[%c0, %c0_0, %c0_1] : memref<1x32x256xf32, #tpu.memory_space<vmem>>, vector<1x32x256xf32>
    %1 = vector.shape_cast %0 : vector<1x32x256xf32> to vector<32x256xf32>
    %c0_2 = arith.constant 0 : index
    %c0_3 = arith.constant 0 : index
    %c0_4 = arith.constant 0 : index
    %2 = vector.load %arg3[%c0_2, %c0_3, %c0_4] : memref<1x32x256xf32, #tpu.memory_space<vmem>>, vector<1x32x256xf32>
    %3 = vector.shape_cast %2 : vector<1x32x256xf32> to vector<32x256xf32>
    %c0_5 = arith.constant 0 : index
    %c0_6 = arith.constant 0 : index
    %4 = vector.load %arg4[%c0_5, %c0_6] : memref<4x32xf32, #tpu.memory_space<vmem>>, vector<4x32xf32>
    %cst = arith.constant dense<0.000000e+00> : vector<4x256xf32>
    %5 = tpu.matmul %4, %3, %cst {dimension_numbers = #tpu.dot_dimension_numbers<[1], [0], [0], [1], [0, 0, 1, 1], [], []>} : vector<4x32xf32>, vector<32x256xf32>, vector<4x256xf32> -> vector<4x256xf32>
    %c0_7 = arith.constant 0 : index
    %c0_8 = arith.constant 0 : index
    %6 = vector.load %arg5[%c0_7, %c0_8] : memref<4x1xf32, #tpu.memory_space<vmem>>, vector<4x1xf32>
    %7 = vector.broadcast %6 : vector<4x1xf32> to vector<4x256xf32>
    %8 = arith.addf %5, %7 : vector<4x256xf32>
    %c0_9 = arith.constant 0 : index
    %c0_10 = arith.constant 0 : index
    %9 = vector.load %arg6[%c0_9, %c0_10] : memref<4x32xf32, #tpu.memory_space<vmem>>, vector<4x32xf32>
    %cst_11 = arith.constant dense<0.000000e+00> : vector<4x256xf32>
    %10 = tpu.matmul %9, %1, %cst_11 {dimension_numbers = #tpu.dot_dimension_numbers<[1], [0], [0], [1], [0, 0, 1, 1], [], []>} : vector<4x32xf32>, vector<32x256xf32>, vector<4x256xf32> -> vector<4x256xf32>
    %c0_12 = arith.constant 0 : index
    %c0_13 = arith.constant 0 : index
    %11 = vector.load %arg7[%c0_12, %c0_13] : memref<4x1xf32, #tpu.memory_space<vmem>>, vector<4x1xf32>
    %12 = vector.broadcast %11 : vector<4x1xf32> to vector<4x256xf32>
    %13 = arith.addf %10, %12 : vector<4x256xf32>
    %c0_14 = arith.constant 0 : index
    %c0_15 = arith.constant 0 : index
    %14 = vector.load %arg8[%c0_14, %c0_15] : memref<32x32xf32, #tpu.memory_space<vmem>>, vector<32x32xf32>
    %cst_16 = arith.constant dense<0.000000e+00> : vector<32x256xf32>
    %15 = tpu.matmul %14, %1, %cst_16 {dimension_numbers = #tpu.dot_dimension_numbers<[1], [0], [0], [1], [0, 0, 1, 1], [], []>} : vector<32x32xf32>, vector<32x256xf32>, vector<32x256xf32> -> vector<32x256xf32>
    %c0_17 = arith.constant 0 : index
    %c0_18 = arith.constant 0 : index
    %16 = vector.load %arg9[%c0_17, %c0_18] : memref<32x1xf32, #tpu.memory_space<vmem>>, vector<32x1xf32>
    %17 = vector.broadcast %16 : vector<32x1xf32> to vector<32x256xf32>
    %18 = arith.addf %15, %17 : vector<32x256xf32>
    %cst_19 = arith.constant dense<0.000000e+00> : vector<256x256xf32>
    %19 = tpu.matmul %8, %13, %cst_19 {dimension_numbers = #tpu.dot_dimension_numbers<[0], [0], [1], [1], [0, 1, 1, 1], [], []>} : vector<4x256xf32>, vector<4x256xf32>, vector<256x256xf32> -> vector<256x256xf32>
    %cst_20 = arith.constant dense<0xFF800000> : vector<256xf32>
    %20 = vector.multi_reduction <maximumf>, %19, %cst_20 [1] : vector<256x256xf32> to vector<256xf32>
    %21 = vector.shape_cast %20 : vector<256xf32> to vector<256x1xf32>
    %22 = vector.broadcast %21 : vector<256x1xf32> to vector<256x256xf32>
    %23 = arith.subf %19, %22 : vector<256x256xf32>
    %24 = math.exp %23 : vector<256x256xf32>
    %cst_21 = arith.constant dense<0.000000e+00> : vector<256xf32>
    %25 = vector.multi_reduction <add>, %24, %cst_21 [1] : vector<256x256xf32> to vector<256xf32>
    %26 = vector.shape_cast %25 : vector<256xf32> to vector<256x1xf32>
    %27 = tpu.reciprocal %26 {approx = true} : vector<256x1xf32> -> vector<256x1xf32>
    %28 = vector.broadcast %27 : vector<256x1xf32> to vector<256x256xf32>
    %29 = arith.mulf %24, %28 : vector<256x256xf32>
    %c0_22 = arith.constant 0 : index
    %c0_23 = arith.constant 0 : index
    %c0_24 = arith.constant 0 : index
    %30 = vector.load %arg12[%c0_22, %c0_23, %c0_24] : memref<1x256x256xf32, #tpu.memory_space<vmem>>, vector<1x256x256xf32>
    %31 = vector.shape_cast %30 : vector<1x256x256xf32> to vector<256x256xf32>
    %32 = vector.shape_cast %29 : vector<256x256xf32> to vector<1x256x256xf32>
    tpu.vector_store %arg12[%c0_22, %c0_23, %c0_24], %32 {strides = array<i32>} : memref<1x256x256xf32, #tpu.memory_space<vmem>>, vector<1x256x256xf32>,
    %cst_25 = arith.constant dense<0.000000e+00> : vector<32x256xf32>
    %33 = tpu.matmul %18, %29, %cst_25 {dimension_numbers = #tpu.dot_dimension_numbers<[1], [1], [0], [0], [0, 0, 1, 0], [], []>} : vector<32x256xf32>, vector<256x256xf32>, vector<32x256xf32> -> vector<32x256xf32>
    %c0_26 = arith.constant 0 : index
    %c0_27 = arith.constant 0 : index
    %34 = vector.load %arg10[%c0_26, %c0_27] : memref<1x1xf32, #tpu.memory_space<vmem>>, vector<1x1xf32>
    %35 = vector.broadcast %34 : vector<1x1xf32> to vector<32x256xf32>
    %36 = arith.mulf %35, %33 : vector<32x256xf32>
    %37 = arith.addf %36, %3 : vector<32x256xf32>
    %c0_28 = arith.constant 0 : index
    %c0_29 = arith.constant 0 : index
    %c0_30 = arith.constant 0 : index
    %38 = vector.load %arg11[%c0_28, %c0_29, %c0_30] : memref<1x32x256xf32, #tpu.memory_space<vmem>>, vector<1x32x256xf32>
    %39 = vector.shape_cast %38 : vector<1x32x256xf32> to vector<32x256xf32>
    %40 = vector.shape_cast %37 : vector<32x256xf32> to vector<1x32x256xf32>
    tpu.vector_store %arg11[%c0_28, %c0_29, %c0_30], %40 {strides = array<i32>} : memref<1x32x256xf32, #tpu.memory_space<vmem>>, vector<1x32x256xf32>,
    return
  }
  func.func @transform_0(%arg0: i32, %arg1: i32) -> (i32, i32, i32) {
    %c0_i32 = arith.constant 0 : i32
    %c0_i32_0 = arith.constant 0 : i32
    %c0_i32_1 = arith.constant 0 : i32
    return %arg0, %c0_i32, %c0_i32_0 : i32, i32, i32
  }
  func.func @transform_1(%arg0: i32, %arg1: i32) -> (i32, i32, i32) {
    %c0_i32 = arith.constant 0 : i32
    %c0_i32_0 = arith.constant 0 : i32
    return %arg0, %c0_i32, %arg1 : i32, i32, i32
  }
  func.func @transform_2(%arg0: i32, %arg1: i32) -> (i32, i32) {
    %c0_i32 = arith.constant 0 : i32
    %c0_i32_0 = arith.constant 0 : i32
    %c0_i32_1 = arith.constant 0 : i32
    return %c0_i32, %c0_i32_0 : i32, i32
  }
  func.func @transform_3(%arg0: i32, %arg1: i32) -> (i32, i32) {
    %c0_i32 = arith.constant 0 : i32
    %c0_i32_0 = arith.constant 0 : i32
    %c0_i32_1 = arith.constant 0 : i32
    return %c0_i32, %c0_i32_0 : i32, i32
  }
  func.func @transform_4(%arg0: i32, %arg1: i32) -> (i32, i32) {
    %c0_i32 = arith.constant 0 : i32
    %c0_i32_0 = arith.constant 0 : i32
    %c0_i32_1 = arith.constant 0 : i32
    return %c0_i32, %c0_i32_0 : i32, i32
  }
  func.func @transform_5(%arg0: i32, %arg1: i32) -> (i32, i32) {
    %c0_i32 = arith.constant 0 : i32
    %c0_i32_0 = arith.constant 0 : i32
    %c0_i32_1 = arith.constant 0 : i32
    return %c0_i32, %c0_i32_0 : i32, i32
  }
  func.func @transform_6(%arg0: i32, %arg1: i32) -> (i32, i32) {
    %c0_i32 = arith.constant 0 : i32
    %c0_i32_0 = arith.constant 0 : i32
    %c0_i32_1 = arith.constant 0 : i32
    return %c0_i32, %c0_i32_0 : i32, i32
  }
  func.func @transform_7(%arg0: i32, %arg1: i32) -> (i32, i32) {
    %c0_i32 = arith.constant 0 : i32
    %c0_i32_0 = arith.constant 0 : i32
    %c0_i32_1 = arith.constant 0 : i32
    return %c0_i32, %c0_i32_0 : i32, i32
  }
  func.func @transform_8(%arg0: i32, %arg1: i32) -> (i32, i32) {
    %c0_i32 = arith.constant 0 : i32
    %c0_i32_0 = arith.constant 0 : i32
    %c0_i32_1 = arith.constant 0 : i32
    return %c0_i32, %c0_i32_0 : i32, i32
  }
  func.func @transform_9(%arg0: i32, %arg1: i32) -> (i32, i32, i32) {
    %c0_i32 = arith.constant 0 : i32
    %c0_i32_0 = arith.constant 0 : i32
    return %arg0, %c0_i32, %arg1 : i32, i32, i32
  }
  func.func @transform_10(%arg0: i32, %arg1: i32) -> (i32, i32, i32) {
    %c0_i32 = arith.constant 0 : i32
    %c0_i32_0 = arith.constant 0 : i32
    return %arg0, %arg1, %c0_i32 : i32, i32, i32
  }
}

</mosaic_0001>

<bundles_post_ra>
// kernel: tpu_custom_call.1
= control target key start
LH: loop header
LB: loop body
LE: loop exit
PB: predicated region body
PF: predicated region fallthrough
CT: control target
= control target key end

     0   :  { %s3780_s0 = inlined_call_operand.hbm [shape: f32[2,32,256], index: 0, kind: input, shape index: {}]   ;;  %s3781_s1 = inlined_call_operand.hbm [shape: f32[2,32,256], index: 1, kind: input, shape index: {}]   ;;  %s3782_s2 = inlined_call_operand.vmem [shape: f32[4,32], index: 2, kind: input, shape index: {}]   ;;  %s3783_s3 = inlined_call_operand.vmem [shape: f32[4,1], index: 3, kind: input, shape index: {}]   ;;  %s3784_s4 = inlined_call_operand.vmem [shape: f32[4,32], index: 4, kind: input, shape index: {}]   ;;  %s3785_s5 = inlined_call_operand.vmem [shape: f32[4,1], index: 5, kind: input, shape index: {}]   ;;  %s3786_s6 = inlined_call_operand.vmem [shape: f32[32,32], index: 6, kind: input, shape index: {}]   ;;  %s3787_s7 = inlined_call_operand.vmem [shape: f32[32,1], index: 7, kind: input, shape index: {}]   ;;  %s3788_s8 = inlined_call_operand.<no memory space> [shape: f32[1,1], index: 8, kind: input, shape index: {}]   ;;  %s3789_s9 = inlined_call_operand.hbm [shape: f32[2,32,256], index: 9, kind: output, shape index: {0}]   ;;  %s3790_s10 = inlined_call_operand.hbm [shape: f32[2,256,256], index: 10, kind: output, shape index: {1}]  }
   0x1   :  { %3823 = sst [smem:[#allocation40_spill]] %s3780_s0  ;;  %v16_v0 = vstv %s3788_s8 }
   0x2   :  { %17 = vst [vmem:[#allocation2] sm:$0x1] %v16_v0 }
   0x3   :  { %18 = vsyncpa [#allocation4], 0 }
   0x4   :  { %20 = vsyncpa [#allocation4 + $0x1], 0 }
   0x5   :  { %21 = vsyncpa [#allocation7], 0 }
   0x6   :  { %23 = vsyncpa [#allocation7 + $0x1], 0 }
   0x7   :  { %24 = vsyncpa [#allocation5], 0 }
   0x8   :  { %26 = vsyncpa [#allocation5 + $0x1], 0 }
   0x9   :  { %27 = vsyncpa [#allocation10], 0 }
   0xa   :  { %29 = vsyncpa [#allocation10 + $0x1], 0  ;;  %s2576_s15 = smov 0   ;;  %s2578_s16 = smov 0  }
   0xb   :  { %s2580_s17 = smov 0   ;;  %s2582_s18 = smov 0  }
   0xc   :  { %s2584_s19 = smov 0   ;;  %s2586_s8 = smov 0  }
   0xd LB: > { %3824 = sst [smem:[#allocation15_spill]] %s2491_s15  ;;  %s1947_s20 = sadd.s32 4294967295, %s2511_s8   ;;  %s2511_s8 = sphi %s2586_s8, %s35_s8   ;;  %s2507_s19 = sphi %s2584_s19, %s3895_s19   ;;  %s2503_s18 = sphi %s2582_s18, %s3894_s18   ;;  %s2499_s17 = sphi %s2580_s17, %s3893_s17   ;;  %s2495_s16 = sphi %s2578_s16, %s3897_s16   ;;  %s2491_s15 = sphi %s2576_s15, %s3896_s15  }
   0xe   : > { %3825 = sst [smem:[#allocation16_spill]] %s2499_s17  ;;  %s1948_s21 = sadd.s32 4294967294, %s2511_s8  }
   0xf   : > { %3826 = sst [smem:[#allocation17_spill]] %s2507_s19  ;;  %s47_s22 = sadd.s32 1, %s2507_s19 }
  0x10   : > { %s54_s23 = sadd.s32 1, %s2499_s17  ;;  %p49_p0 = scmp.ge.s32.totalorder %s47_s22, 2 }
  0x11   : > { %p61_p1 = scmp.ne.s32.totalorder %s2499_s17, %s2495_s16  ;;  %p62_p2 = scmp.eq.s32.totalorder %s2511_s8, 0 }
  0x12   : > { %p67_p3 = scmp.ne.s32.totalorder %s2495_s16, %s2491_s15  ;;  %s3899_s22 = smov (%p49_p0, %s47_s22), 0 }
  0x13   : > { %3827 = sst [smem:[#allocation18_spill]] %s3899_s22  ;;  %p2617_p4 = por %p62_p2, %p61_p1 }
  0x14   : > { %p68_p5 = scmp.eq.s32.totalorder %s1947_s20, 0  ;;  %s51_s25 = ssub.s32 %s2507_s19, %s3899_s22 }
  0x15   : > { %p268_p6 = scmp.eq.s32.totalorder %s1947_s20, 1  ;;  %p52_p7 = scmp.eq.s32.totalorder %s51_s25, 0 }
  0x16   : > { %p2623_p8 = por %p68_p5, %p67_p3  ;;  %p274_p10 = scmp.eq.s32.totalorder %s1948_s21, 1 }
  0x17   : > { %p2627_p9 = por %p268_p6, %p61_p1  ;;  %p1950_p12 = scmp.ge.s32.totalorder %s2511_s8, 2 }
  0x18   : > { %s2632_s28 = scalar_select %p52_p7, %s2499_s17, %s54_s23  }
  0x19   : > { %p2634_p11 = por %p274_p10, %p67_p3  ;;  %p2074_p13 = scmp.lt.s32.totalorder %s2511_s8, 2 }
  0x1a   : > { %3831 = sst [smem:[#allocation19_spill]] %s2632_s28  ;;  %s2641_s30 = sand.u32 1, %s2499_s17  }
  0x1b   : > { %s3832_s29 = scalar_select %p2634_p11, 1, 0 }
  0x1c   : > { %s1951_s11 = sshll.u32 %s2641_s30, 6  ;;  %s2048_s12 = sshll.u32 %s2507_s19, 6 }
  0x1d   : > { %3833 = sst [smem:[#allocation20_spill]] %s3832_s29  ;;  %s347_s21 = scalar_lea.vmem [#allocation3], %s1951_s11 }
  0x1e   : > { %s3834_s0 = sld [smem:[#allocation40_spill]]  ;;  %s355_s23 = sshll.u32 %s347_s21, 4  ;;  %s356_s23 = int_to_ptr.vmem [resolvable:$true] %s355_s23 }
  0x1f   : > { %p2650_p0 = pnand %p2074_p13, %p2617_p4  ;;  %p1957_p1 = scmp.ge.s32.totalorder %s2511_s8, 1 }
  0x20   : > { %s344_s28 = scalar_lea.sflag [#allocation4], %s2641_s30  ;;  %s2513_s19 = smov 256  }
  0x21   : > { %s2514_s17 = smov 16   ;;  %p387_p2 = scmp.lt.s32.totalorder %s2511_s8, 3 }
  0x22   : > { %s369_s24 = scalar_lea.vmem [#allocation6], %s1951_s11  ;;  %s366_s29 = scalar_lea.sflag [#allocation7], %s2641_s30 }
  0x23   : > { %p388_p3 = pnand %p1957_p1, %p387_p2 }
  0x24   : > { %s352_s20 = scalar_lea.hbm %s3834_s0, %s2048_s12  ;;  %s379_s0 = sshll.u32 %s369_s24, 4  ;;  %s380_s0 = int_to_ptr.vmem [resolvable:$true] %s379_s0 }
  0x25   : > { %s353_s25 = sshll.u32 %s352_s20, 4  ;;  %s376_s20 = scalar_lea.hbm %s3781_s1, %s2048_s12  ;;  %s354_s25 = int_to_ptr.hbm [resolvable:$true] %s353_s25 }
  0x26   : > { %2063 = dma.hbm_to_vmem [thread:$0]  (!%p2650_p0), %s354_s25, 1024, %s356_s23, %s344_s28, %s2513_s19, %s2513_s19, %s2514_s17  }
  0x27   : > { %s377_s21 = sshll.u32 %s376_s20, 4  ;;  %391 = sbr.rel (%p388_p3) target bundleno = 1380 (0x564), region = 56  ;;  %s378_s21 = int_to_ptr.hbm [resolvable:$true] %s377_s21 }
  0x28   : > { %2066 = dma.hbm_to_vmem [thread:$0]  (!%p2650_p0), %s378_s21, 1024, %s380_s0, %s366_s29, %s2513_s19, %s2513_s19, %s2514_s17  }
  0x2c   : > { %s2666_s15 = sand.u32 1, %s2495_s16  }
  0x2d   : > { %s2669_s28 = sshll.u32 %s2666_s15, 6  ;;  %s394_s12 = scalar_lea.sflag [#allocation4], %s2666_s15 }
  0x2e   : > { %s2673_s23 = scalar_lea.vmem [#allocation3], %s2669_s28 }
  0x2f   : > { %2474 = dma.done.wait (%p2623_p8), %s394_s12, 1024  }
  0x30   : > { %2476 = vsyncadd (%p2623_p8), %s394_s12, 4294966272  ;;  %s404_s0 = scalar_lea.sflag [#allocation7], %s2666_s15  ;;  %s2681_s17 = scalar_lea.vmem [#allocation6], %s2669_s28 }
  0x31   : > { %2478 = dma.done.wait (%p2623_p8), %s404_s0, 1024  }
  0x32   : > { %2480 = vsyncadd (%p2623_p8), %s404_s0, 4294966272  ;;  %v2515_v1 = vmov 0   ;;  %v472_v2 = vld [vmem:[%s2681_s17 + $0x30] sm:$0xff]  ;;  %v473_v3 = vld [vmem:[%s2681_s17 + $0x38] sm:$0xff]  ;;  %vm481_vm0 = vcmask 261120   ;;  %vm834_vm1 = vcmask 1043456  }
  0x33   : > { %2130 = vset.pattern.permute.xlu0 %v2515_v1  ;;  %2131 = vset.pattern.permute.xlu2 %v2515_v1  ;;  %v470_v4 = vld [vmem:[%s2681_s17 + $0x20] sm:$0xff]  ;;  %v471_v5 = vld [vmem:[%s2681_s17 + $0x28] sm:$0xff]  ;;  %v468_v6 = vld [vmem:[%s2681_s17 + $0x10] sm:$0xff]  ;;  %vm737_vm2 = vcmask 31744   ;;  %s1961_s12 = sshll.u32 %s2666_s15, 9  ;;  %s3689_s24 = scalar_lea.vmem [#allocation8], %s2669_s28 }
  0x34   : > { %497 = vmatpush.msra.mxu0 %v472_v2  ;;  %517 = vmatpush.msra.mxu1 %v473_v3  ;;  %v469_v7 = vld [vmem:[%s2681_s17 + $0x18] sm:$0xff]  ;;  %v466_v9 = vld [vmem:[%s2681_s17] sm:$0xff]  ;;  %v467_v10 = vld [vmem:[%s2681_s17 + $0x8] sm:$0xff]  ;;  %s2051_s28 = sshll.u32 %s2503_s18, 9  ;;  %s1764_s29 = scalar_lea.sflag [#allocation10], %s2666_s15 }
  0x35   : > { %v475_v8 = vld [vmem:[%s3783_s3] sm:$0xf]  ;;  %v464_v12 = vld [vmem:[%s2673_s23 + $0x30] sm:$0xff]  ;;  %v463_v15 = vld [vmem:[%s2673_s23 + $0x28] sm:$0xff]  ;;  %s1797_s22 = scalar_lea.hbm %s3790_s10, %s2051_s28  ;;  %s2413_s14 = scalar_lea.hbm %s3790_s10, 1024 }
  0x36   : > { %498 = vmatpush.msra.mxu0 %v470_v4  ;;  %518 = vmatpush.msra.mxu1 %v471_v5  ;;  %v474_v11 = vld [vmem:[%s3782_s2] sm:$0xf]  ;;  %v460_v17 = vld [vmem:[%s2673_s23 + $0x10] sm:$0xff]  ;;  %v459_v20 = vld [vmem:[%s2673_s23 + $0x8] sm:$0xff]  ;;  %s1800_s26 = sshll.u32 %s1797_s22, 4  ;;  %s1801_s26 = int_to_ptr.hbm [resolvable:$true] %s1800_s26 }
  0x37   : > { %478 = vperm.xlu0 %2130, %v475_v8   ;;  %v465_v13 = vld [vmem:[%s2673_s23 + $0x38] sm:$0xff]  ;;  %v462_v14 = vld [vmem:[%s2673_s23 + $0x20] sm:$0xff]  ;;  %s2407_s30 = sshra.s32 %s1801_s26, 4  ;;  %s2408_s30 = int_to_ptr.hbm [resolvable:$true] %s2407_s30 }
  0x38   : > { %499 = vmatpush.msra.mxu0 %v468_v6  ;;  %519 = vmatpush.msra.mxu1 %v469_v7  ;;  %v526_v16 = vld [vmem:[%s3785_s5] sm:$0xf]  ;;  %s2409_s11 = scalar_lea.hbm %s2408_s30, 512  ;;  %p2414_p7 = scmp.lt.s32.totalorder %s2408_s30, %s3790_s10 }
  0x39   : > { %v461_v18 = vld [vmem:[%s2673_s23 + $0x18] sm:$0xff]  ;;  %v458_v19 = vld [vmem:[%s2673_s23] sm:$0xff]  ;;  %s3156_s23 = scalar_lea.vmem [#allocation9], %s1961_s12  ;;  %p2410_p4 = scmp.ne.s32.totalorder %s2408_s30, %s2409_s11 }
  0x3a   : > { %500 = vmatpush.msra.mxu0 %v466_v9  ;;  %520 = vmatpush.msra.mxu1 %v467_v10  ;;  %v525_v21 = vld [vmem:[%s3784_s4] sm:$0xf]  ;;  %s1798_s12 = sshll.u32 %s3156_s23, 4  ;;  %p2415_p8 = scmp.lt.s32.totalorder %s2413_s14, %s2409_s11  ;;  %s1799_s12 = int_to_ptr.vmem [resolvable:$true] %s1798_s12 }
  0x3b   : > { %1962 = vmatmul.msk.f32.vlgmr.msra.gmra.mxu0 %vm481_vm0, %v474_v11  ;;  %1963 = vmatmul.msk.f32.vlgmr.msra.gmra.mxu1 %vm481_vm0, %v474_v11  ;;  %p2411_p5 = pnand %p2410_p4, %p2627_p9 }
  0x3c   : > { %547 = vmatpush.msrb.mxu0 %v464_v12  ;;  %567 = vmatpush.msrb.mxu1 %v465_v13  ;;  %p2416_p10 = por %p2415_p8, %p2414_p7 }
  0x3d   : > { %p2412_p6 = pneg %p2411_p5 }
  0x3e   : > { %548 = vmatpush.msrb.mxu0 %v462_v14  ;;  %568 = vmatpush.msrb.mxu1 %v463_v15 }
  0x3f   : > { %529 = vperm.xlu0 %2130, %v526_v16   ;;  %p2417_p13 = pnand %p2416_p10, %p2412_p6 }
  0x40   : > { %549 = vmatpush.msrb.mxu0 %v460_v17  ;;  %569 = vmatpush.msrb.mxu1 %v461_v18 }
  0x42   : > { %550 = vmatpush.msrb.mxu0 %v458_v19  ;;  %570 = vmatpush.msrb.mxu1 %v459_v20 }
  0x43   : > { %1964 = vmatmul.msk.f32.vlgmr.msrb.gmra.mxu0 %vm481_vm0, %v525_v21  ;;  %1965 = vmatmul.msk.f32.vlgmr.msrb.gmra.mxu1 %vm481_vm0, %v525_v21 }
  0x44   : > { %627 = vmatpush.msra.mxu0 %v464_v12  ;;  %656 = vmatpush.msra.mxu1 %v465_v13 }
  0x46   : > { %628 = vmatpush.msra.mxu0 %v462_v14  ;;  %657 = vmatpush.msra.mxu1 %v463_v15 }
  0x48   : > { %629 = vmatpush.msra.mxu0 %v460_v17  ;;  %658 = vmatpush.msra.mxu1 %v461_v18 }
  0x4a   : > { %630 = vmatpush.msra.mxu0 %v458_v19  ;;  %659 = vmatpush.msra.mxu1 %v459_v20 }
  0xa9   : > { %v479_v22 = vpop.permute.xlu0 %478 }
  0xb1   : > { %v530_v27 = vpop.permute.xlu0 %529 }
  0xb8   : > { %v502_v23 = vpop.f32.mrf.mxu0  ;;  %v522_v24 = vpop.f32.mrf.mxu1 }
  0xb9   : > { %v523_v25 = vadd.f32 %v522_v24, %v479_v22  ;;  %v503_v26 = vadd.f32 %v502_v23, %v479_v22 }
  0xbb   : > { %673 = vxpose.xlu1.b32.start.end [1/1] (short) %v503_v26, 128 }
  0xc0   : > { %v552_v28 = vpop.f32.mrf.mxu0  ;;  %v572_v29 = vpop.f32.mrf.mxu1 }
  0xc1   : > { %v553_v30 = vadd.f32 %v552_v28, %v530_v27  ;;  %v573_v31 = vadd.f32 %v572_v29, %v530_v27 }
  0xc3   : > { %1974 = vmatpush.msk.msra.mxu2 %vm834_vm1, %v553_v30  ;;  %2007 = vmatpush.msk.msra.mxu3 %vm834_vm1, %v573_v31 }
 0x13b   : > { %705 = vxpose.xlu1.b32.start.end [1/1] (short) %v523_v25, 128 }
 0x15f   : > { %v689_v32 = vpop.trf.xlu1 }
 0x160   : > { %1975 = vmatmul.msk.f32.vlgmr.msra.gmra.mxu2 %vm737_vm2, %v689_v32  ;;  %2008 = vmatmul.msk.f32.vlgmr.msra.gmra.mxu3 %vm737_vm2, %v689_v32 }
 0x167   : > { %v690_v33 = vpop.trf.xlu1 }
 0x168   : > { %1976 = vmatmul.msk.f32.gmra.mxu2 %vm737_vm2, %v690_v33  ;;  %2009 = vmatmul.msk.f32.gmra.mxu3 %vm737_vm2, %v690_v33 }
 0x16f   : > { %v691_v34 = vpop.trf.xlu1 }
 0x170   : > { %1977 = vmatmul.msk.f32.gmra.mxu2 %vm737_vm2, %v691_v34  ;;  %2010 = vmatmul.msk.f32.gmra.mxu3 %vm737_vm2, %v691_v34 }
 0x177   : > { %v692_v35 = vpop.trf.xlu1 }
 0x178   : > { %1978 = vmatmul.msk.f32.gmra.mxu2 %vm737_vm2, %v692_v35  ;;  %2011 = vmatmul.msk.f32.gmra.mxu3 %vm737_vm2, %v692_v35 }
 0x17f   : > { %v693_v36 = vpop.trf.xlu1 }
 0x180   : > { %1979 = vmatmul.msk.f32.gmra.mxu2 %vm737_vm2, %v693_v36  ;;  %2012 = vmatmul.msk.f32.gmra.mxu3 %vm737_vm2, %v693_v36 }
 0x187   : > { %v694_v37 = vpop.trf.xlu1 }
 0x188   : > { %1980 = vmatmul.msk.f32.gmra.mxu2 %vm737_vm2, %v694_v37  ;;  %2013 = vmatmul.msk.f32.gmra.mxu3 %vm737_vm2, %v694_v37 }
 0x18f   : > { %v695_v38 = vpop.trf.xlu1 }
 0x190   : > { %1981 = vmatmul.msk.f32.gmra.mxu2 %vm737_vm2, %v695_v38  ;;  %2014 = vmatmul.msk.f32.gmra.mxu3 %vm737_vm2, %v695_v38 }
 0x197   : > { %v696_v39 = vpop.trf.xlu1 }
 0x198   : > { %1982 = vmatmul.msk.f32.gmra.mxu2 %vm737_vm2, %v696_v39  ;;  %2015 = vmatmul.msk.f32.gmra.mxu3 %vm737_vm2, %v696_v39 }
 0x19f   : > { %v697_v40 = vpop.trf.xlu1 }
 0x1a0   : > { %1983 = vmatmul.msk.f32.gmra.mxu2 %vm737_vm2, %v697_v40  ;;  %2016 = vmatmul.msk.f32.gmra.mxu3 %vm737_vm2, %v697_v40 }
 0x1a7   : > { %v698_v41 = vpop.trf.xlu1 }
 0x1a8   : > { %1984 = vmatmul.msk.f32.gmra.mxu2 %vm737_vm2, %v698_v41  ;;  %2017 = vmatmul.msk.f32.gmra.mxu3 %vm737_vm2, %v698_v41 }
 0x1af   : > { %v699_v42 = vpop.trf.xlu1 }
 0x1b0   : > { %1985 = vmatmul.msk.f32.gmra.mxu2 %vm737_vm2, %v699_v42  ;;  %2018 = vmatmul.msk.f32.gmra.mxu3 %vm737_vm2, %v699_v42 }
 0x1b7   : > { %v700_v43 = vpop.trf.xlu1 }
 0x1b8   : > { %1986 = vmatmul.msk.f32.gmra.mxu2 %vm737_vm2, %v700_v43  ;;  %2019 = vmatmul.msk.f32.gmra.mxu3 %vm737_vm2, %v700_v43 }
 0x1bf   : > { %v701_v44 = vpop.trf.xlu1 }
 0x1c0   : > { %1987 = vmatmul.msk.f32.gmra.mxu2 %vm737_vm2, %v701_v44  ;;  %2020 = vmatmul.msk.f32.gmra.mxu3 %vm737_vm2, %v701_v44 }
 0x1c7   : > { %v702_v45 = vpop.trf.xlu1 }
 0x1c8   : > { %1988 = vmatmul.msk.f32.gmra.mxu2 %vm737_vm2, %v702_v45  ;;  %2021 = vmatmul.msk.f32.gmra.mxu3 %vm737_vm2, %v702_v45 }
 0x1cf   : > { %v703_v46 = vpop.trf.xlu1 }
 0x1d0   : > { %1989 = vmatmul.msk.f32.gmra.mxu2 %vm737_vm2, %v703_v46  ;;  %2022 = vmatmul.msk.f32.gmra.mxu3 %vm737_vm2, %v703_v46 }
 0x1d7   : > { %v704_v47 = vpop.trf.xlu1 }
 0x1d8   : > { %1990 = vmatmul.msk.f32.gmra.mxu2 %vm737_vm2, %v704_v47  ;;  %2023 = vmatmul.msk.f32.gmra.mxu3 %vm737_vm2, %v704_v47 }
 0x1df   : > { %v721_v48 = vpop.trf.xlu1 }
 0x1e0   : > { %1991 = vmatmul.msk.f32.gmra.mxu2 %vm737_vm2, %v721_v48  ;;  %2024 = vmatmul.msk.f32.gmra.mxu3 %vm737_vm2, %v721_v48 }
 0x1e3   : > { %v2753_v49 = vpop.f32.mrf.mxu2  ;;  %v2755_v50 = vpop.f32.mrf.mxu3 }
 0x1e4   : > { %3836 = vst [vmem:[#allocation21_spill] sm:$0xff] %v2755_v50  ;;  %v1067_v51 = vmax.f32 %v2753_v49, %v2755_v50 }
 0x1e6   : > { %1068 = vmax.xlane.f32.xlu2 %v1067_v51 }
 0x1e7   : > { %v722_v52 = vpop.trf.xlu1 }
 0x1e8   : > { %1992 = vmatmul.msk.f32.gmra.mxu2 %vm737_vm2, %v722_v52  ;;  %2025 = vmatmul.msk.f32.gmra.mxu3 %vm737_vm2, %v722_v52 }
 0x1eb   : > { %v2761_v53 = vpop.f32.mrf.mxu2  ;;  %v2763_v54 = vpop.f32.mrf.mxu3 }
 0x1ec   : > { %v1070_v55 = vmax.f32 %v2761_v53, %v2763_v54 }
 0x1ee   : > { %1071 = vmax.xlane.f32.xlu0 %v1070_v55 }
 0x1ef   : > { %v723_v56 = vpop.trf.xlu1 }
 0x1f0   : > { %1993 = vmatmul.msk.f32.gmra.mxu2 %vm737_vm2, %v723_v56  ;;  %2026 = vmatmul.msk.f32.gmra.mxu3 %vm737_vm2, %v723_v56 }
 0x1f3   : > { %v2769_v57 = vpop.f32.mrf.mxu2  ;;  %v2771_v58 = vpop.f32.mrf.mxu3 }
 0x1f4   : > { %v1073_v59 = vmax.f32 %v2769_v57, %v2771_v58 }
 0x1f6   : > { %1074 = vmax.xlane.f32.xlu2 %v1073_v59 }
 0x1f7   : > { %v724_v60 = vpop.trf.xlu1 }
 0x1f8   : > { %1994 = vmatmul.msk.f32.gmra.mxu2 %vm737_vm2, %v724_v60  ;;  %2027 = vmatmul.msk.f32.gmra.mxu3 %vm737_vm2, %v724_v60 }
 0x1fb   : > { %v2777_v61 = vpop.f32.mrf.mxu2  ;;  %v2779_v62 = vpop.f32.mrf.mxu3 }
 0x1fc   : > { %v1076_v63 = vmax.f32 %v2777_v61, %v2779_v62 }
 0x1fe   : > { %1077 = vmax.xlane.f32.xlu2 %v1076_v63 }
 0x1ff   : > { %v725_v0 = vpop.trf.xlu1 }
 0x200   : > { %1995 = vmatmul.msk.f32.gmra.mxu2 %vm737_vm2, %v725_v0  ;;  %2028 = vmatmul.msk.f32.gmra.mxu3 %vm737_vm2, %v725_v0 }
 0x203   : > { %v2785_v1 = vpop.f32.mrf.mxu2  ;;  %v2787_v2 = vpop.f32.mrf.mxu3 }
 0x204   : > { %v1079_v3 = vmax.f32 %v2785_v1, %v2787_v2 }
 0x206   : > { %1080 = vmax.xlane.f32.xlu2 %v1079_v3 }
 0x207   : > { %v726_v4 = vpop.trf.xlu1 }
 0x208   : > { %1996 = vmatmul.msk.f32.gmra.mxu2 %vm737_vm2, %v726_v4  ;;  %2029 = vmatmul.msk.f32.gmra.mxu3 %vm737_vm2, %v726_v4 }
 0x20b   : > { %v2793_v5 = vpop.f32.mrf.mxu2  ;;  %v2795_v6 = vpop.f32.mrf.mxu3 }
 0x20c   : > { %v1082_v7 = vmax.f32 %v2793_v5, %v2795_v6 }
 0x20e   : > { %1083 = vmax.xlane.f32.xlu2 %v1082_v7 }
 0x20f   : > { %v727_v8 = vpop.trf.xlu1 }
 0x210   : > { %1997 = vmatmul.msk.f32.gmra.mxu2 %vm737_vm2, %v727_v8  ;;  %2030 = vmatmul.msk.f32.gmra.mxu3 %vm737_vm2, %v727_v8 }
 0x213   : > { %v2801_v9 = vpop.f32.mrf.mxu2  ;;  %v2803_v10 = vpop.f32.mrf.mxu3 }
 0x214   : > { %v1085_v11 = vmax.f32 %v2801_v9, %v2803_v10 }
 0x216   : > { %1086 = vmax.xlane.f32.xlu2 %v1085_v11 }
 0x217   : > { %v728_v12 = vpop.trf.xlu1 }
 0x218   : > { %1998 = vmatmul.msk.f32.gmra.mxu2 %vm737_vm2, %v728_v12  ;;  %2031 = vmatmul.msk.f32.gmra.mxu3 %vm737_vm2, %v728_v12 }
 0x21b   : > { %v2809_v13 = vpop.f32.mrf.mxu2  ;;  %v2811_v14 = vpop.f32.mrf.mxu3 }
 0x21c   : > { %v1088_v15 = vmax.f32 %v2809_v13, %v2811_v14 }
 0x21e   : > { %1089 = vmax.xlane.f32.xlu2 %v1088_v15 }
 0x21f   : > { %v729_v16 = vpop.trf.xlu1 }
 0x220   : > { %1999 = vmatmul.msk.f32.gmra.mxu2 %vm737_vm2, %v729_v16  ;;  %2032 = vmatmul.msk.f32.gmra.mxu3 %vm737_vm2, %v729_v16 }
 0x223   : > { %v2817_v17 = vpop.f32.mrf.mxu2  ;;  %v2819_v18 = vpop.f32.mrf.mxu3 }
 0x224   : > { %v1091_v19 = vmax.f32 %v2817_v17, %v2819_v18 }
 0x226   : > { %1092 = vmax.xlane.f32.xlu2 %v1091_v19 }
 0x227   : > { %v730_v20 = vpop.trf.xlu1 }
 0x228   : > { %2000 = vmatmul.msk.f32.gmra.mxu2 %vm737_vm2, %v730_v20  ;;  %2033 = vmatmul.msk.f32.gmra.mxu3 %vm737_vm2, %v730_v20 }
 0x22b   : > { %v2825_v21 = vpop.f32.mrf.mxu2  ;;  %v2827_v22 = vpop.f32.mrf.mxu3 }
 0x22c   : > { %v1094_v23 = vmax.f32 %v2825_v21, %v2827_v22 }
 0x22e   : > { %1095 = vmax.xlane.f32.xlu2 %v1094_v23 }
 0x22f   : > { %v731_v24 = vpop.trf.xlu1 }
 0x230   : > { %2001 = vmatmul.msk.f32.gmra.mxu2 %vm737_vm2, %v731_v24  ;;  %2034 = vmatmul.msk.f32.gmra.mxu3 %vm737_vm2, %v731_v24 }
 0x233   : > { %v2833_v25 = vpop.f32.mrf.mxu2  ;;  %v2835_v26 = vpop.f32.mrf.mxu3 }
 0x234   : > { %v1097_v27 = vmax.f32 %v2833_v25, %v2835_v26 }
 0x236   : > { %1098 = vmax.xlane.f32.xlu2 %v1097_v27 }
 0x237   : > { %v732_v28 = vpop.trf.xlu1 }
 0x238   : > { %2002 = vmatmul.msk.f32.gmra.mxu2 %vm737_vm2, %v732_v28  ;;  %2035 = vmatmul.msk.f32.gmra.mxu3 %vm737_vm2, %v732_v28 }
 0x23b   : > { %v2841_v29 = vpop.f32.mrf.mxu2  ;;  %v2843_v30 = vpop.f32.mrf.mxu3 }
 0x23c   : > { %v1100_v31 = vmax.f32 %v2841_v29, %v2843_v30 }
 0x23e   : > { %1101 = vmax.xlane.f32.xlu2 %v1100_v31 }
 0x23f   : > { %v733_v32 = vpop.trf.xlu1 }
 0x240   : > { %2003 = vmatmul.msk.f32.gmra.mxu2 %vm737_vm2, %v733_v32  ;;  %2036 = vmatmul.msk.f32.gmra.mxu3 %vm737_vm2, %v733_v32 }
 0x243   : > { %v2849_v33 = vpop.f32.mrf.mxu2  ;;  %v2851_v34 = vpop.f32.mrf.mxu3 }
 0x244   : > { %v1103_v35 = vmax.f32 %v2849_v33, %v2851_v34 }
 0x246   : > { %1104 = vmax.xlane.f32.xlu2 %v1103_v35 }
 0x24b   : > { %v2855_v36 = vpop.f32.mrf.mxu2  ;;  %v2857_v37 = vpop.f32.mrf.mxu3 }
 0x24c   : > { %v1106_v38 = vmax.f32 %v2855_v36, %v2857_v37 }
 0x24e   : > { %1107 = vmax.xlane.f32.xlu0 %v1106_v38 }
 0x253   : > { %v2861_v39 = vpop.f32.mrf.mxu2  ;;  %v2863_v40 = vpop.f32.mrf.mxu3 }
 0x254   : > { %3837 = vst [vmem:[#allocation22_spill] sm:$0xff] %v2861_v39  ;;  %v1109_v41 = vmax.f32 %v2861_v39, %v2863_v40 }
 0x255   : > { %3838 = vst [vmem:[#allocation23_spill] sm:$0xff] %v2863_v40 }
 0x256   : > { %1110 = vmax.xlane.f32.xlu2 %v1109_v41 }
 0x259   : > { %v2873_v45 = vpop.xlane.xlu2 %1068 }
 0x25b   : > { %v2867_v42 = vpop.f32.mrf.mxu2  ;;  %v2869_v43 = vpop.f32.mrf.mxu3 }
 0x25c   : > { %v1112_v44 = vmax.f32 %v2867_v42, %v2869_v43 }
 0x25e   : > { %1113 = vmax.xlane.f32.xlu2 %v1112_v44 }
 0x263   : > { %v2875_v46 = vpop.f32.mrf.mxu2  ;;  %v2877_v47 = vpop.f32.mrf.mxu3 }
 0x264   : > { %3839 = vst [vmem:[#allocation24_spill] sm:$0xff] %v2875_v46 }
 0x265   : > { %3840 = vst [vmem:[#allocation25_spill] sm:$0xff] %v2877_v47 }
 0x269   : > { %v2879_v48 = vpop.xlane.xlu2 %1074 }
 0x26b   : > { %v2881_v51 = vpop.f32.mrf.mxu2  ;;  %v2883_v52 = vpop.f32.mrf.mxu3 }
 0x26c   : > { %3841 = vst [vmem:[#allocation26_spill] sm:$0xff] %v2881_v51 }
 0x26d   : > { %3842 = vst [vmem:[#allocation27_spill] sm:$0xff] %v2883_v52 }
 0x271   : > { %v2885_v55 = vpop.xlane.xlu2 %1077 }
 0x273   : > { %v2887_v56 = vpop.f32.mrf.mxu2  ;;  %v2889_v59 = vpop.f32.mrf.mxu3 }
 0x274   : > { %3843 = vst [vmem:[#allocation28_spill] sm:$0xff] %v2887_v56 }
 0x275   : > { %3844 = vst [vmem:[#allocation29_spill] sm:$0xff] %v2889_v59 }
 0x279   : > { %v2891_v60 = vpop.xlane.xlu2 %1080 }
 0x27b   : > { %v2893_v63 = vpop.f32.mrf.mxu2  ;;  %v2895_v0 = vpop.f32.mrf.mxu3 }
 0x281   : > { %v2897_v3 = vpop.xlane.xlu2 %1083 }
 0x283   : > { %v2899_v4 = vpop.f32.mrf.mxu2  ;;  %v2901_v7 = vpop.f32.mrf.mxu3 }
 0x289   : > { %v2903_v8 = vpop.xlane.xlu2 %1086 }
 0x28b   : > { %v2905_v11 = vpop.f32.mrf.mxu2  ;;  %v2907_v12 = vpop.f32.mrf.mxu3 }
 0x291   : > { %v2909_v15 = vpop.xlane.xlu2 %1089 }
 0x293   : > { %v2911_v16 = vpop.f32.mrf.mxu2  ;;  %v2913_v19 = vpop.f32.mrf.mxu3 }
 0x294   : > { %3845 = vst [vmem:[#allocation30_spill] sm:$0xff] %v2911_v16  ;;  %v1133_v39 = vmax.f32 %v2911_v16, %v2913_v19 }
 0x295   : > { %3846 = vst [vmem:[#allocation31_spill] sm:$0xff] %v2913_v19 }
 0x299   : > { %v2915_v20 = vpop.xlane.xlu2 %1092 }
 0x29b   : > { %v2917_v23 = vpop.f32.mrf.mxu2  ;;  %v2919_v24 = vpop.f32.mrf.mxu3 }
 0x29c   : > { %3847 = vst [vmem:[#allocation32_spill] sm:$0xff] %v2917_v23  ;;  %v1136_v27 = vmax.f32 %v2917_v23, %v2919_v24 }
 0x29d   : > { %3848 = vst [vmem:[#allocation33_spill] sm:$0xff] %v2919_v24 }
 0x29e   : > { %1137 = vmax.xlane.f32.xlu0 %v1136_v27 }
 0x2a1   : > { %v2923_v28 = vpop.xlane.xlu2 %1095 }
 0x2a3   : > { %v2925_v31 = vpop.f32.mrf.mxu2  ;;  %v2927_v32 = vpop.f32.mrf.mxu3 }
 0x2a4   : > { %3849 = vst [vmem:[#allocation34_spill] sm:$0xff] %v2925_v31  ;;  %v1139_v35 = vmax.f32 %v2925_v31, %v2927_v32 }
 0x2a5   : > { %3850 = vst [vmem:[#allocation35_spill] sm:$0xff] %v2927_v32  ;;  %v734_v32 = vpop.trf.xlu1 }
 0x2a6   : > { %1140 = vmax.xlane.f32.xlu0 %v1139_v35  ;;  %2004 = vmatmul.msk.f32.gmra.mxu2 %vm737_vm2, %v734_v32 }
 0x2a7   : > { %2037 = vmatmul.msk.f32.gmra.mxu3 %vm737_vm2, %v734_v32 }
 0x2a9   : > { %v1099_v38 = vpop.xlane.xlu2 %1098 }
 0x2ab   : > { %v2931_v41 = vpop.f32.mrf.mxu2  ;;  %v2933_v44 = vpop.f32.mrf.mxu3 }
 0x2ac   : > { %3851 = vst [vmem:[#allocation36_spill] sm:$0xff] %v2931_v41  ;;  %v1142_v40 = vmax.f32 %v2931_v41, %v2933_v44 }
 0x2ad   : > { %3852 = vst [vmem:[#allocation37_spill] sm:$0xff] %v2933_v44 }
 0x2ae   : > { %1143 = vmax.xlane.f32.xlu2 %v1142_v40 }
 0x2b1   : > { %v1102_v27 = vpop.xlane.xlu2 %1101 }
 0x2b2   : > { %v1185_v40 = vsub.f32 %v2841_v29, %v1102_v27  ;;  %v1186_v50 = vsub.f32 %v2843_v30, %v1102_v27  ;;  %v1183_v30 = vsub.f32 %v2833_v25, %v1099_v38 }
 0x2b3   : > { %v2937_v24 = vpop.f32.mrf.mxu2  ;;  %v2939_v23 = vpop.f32.mrf.mxu3 }
 0x2b4   : > { %3853 = vst [vmem:[#allocation38_spill] sm:$0xff] %v2937_v24  ;;  %v1145_v35 = vmax.f32 %v2937_v24, %v2939_v23  ;;  %v1271_v24 = vmul.f32 1.442695, %v1185_v40  ;;  %v1273_v29 = vmul.f32 1.442695, %v1186_v50  ;;  %v1127_v50 = vmax.f32 %v2899_v4, %v2901_v7 }
 0x2b5   : > { %3854 = vst [vmem:[#allocation39_spill] sm:$0xff] %v2939_v23  ;;  %v1130_v23 = vmax.f32 %v2905_v11, %v2907_v12  ;;  %v1267_v40 = vmul.f32 1.442695, %v1183_v30  ;;  %v1124_v30 = vmax.f32 %v2893_v63, %v2895_v0 }
 0x2b6   : > { %1134 = vmax.xlane.f32.xlu2 %v1133_v39  ;;  %1146 = vmax.xlane.f32.xlu0 %v1145_v35 }
 0x2b9   : > { %v1105_v44 = vpop.xlane.xlu2 %1104 }
 0x2ba   : > { %v1187_v41 = vsub.f32 %v2849_v33, %v1105_v44  ;;  %v1188_v31 = vsub.f32 %v2851_v34, %v1105_v44  ;;  %v735_v33 = vpop.trf.xlu1  ;;  %v1184_v34 = vsub.f32 %v2835_v26, %v1099_v38  ;;  %v1175_v38 = vsub.f32 %v2801_v9, %v2903_v8 }
 0x2bb   : > { %v2951_v19 = vpop.f32.mrf.mxu2  ;;  %v2953_v16 = vpop.f32.mrf.mxu3  ;;  %2005 = vmatmul.msk.f32.gmra.mxu2 %vm737_vm2, %v735_v33  ;;  %2038 = vmatmul.msk.f32.gmra.mxu3 %vm737_vm2, %v735_v33 }
 0x2bc   : > { %v1275_v39 = vmul.f32 1.442695, %v1187_v41  ;;  %v1277_v35 = vmul.f32 1.442695, %v1188_v31  ;;  %v1148_v32 = vmax.f32 %v2951_v19, %v2953_v16  ;;  %v1269_v26 = vmul.f32 1.442695, %v1184_v34 }
 0x2bd   : > { %v1251_v33 = vmul.f32 1.442695, %v1175_v38 }
 0x2be   : > { %2133 = vpow2.f32 %v1275_v39  ;;  %1131 = vmax.xlane.f32.xlu2 %v1130_v23  ;;  %1149 = vmax.xlane.f32.xlu0 %v1148_v32  ;;  %v1181_v32 = vsub.f32 %v2825_v21, %v2923_v28 }
 0x2bf   : > { %2135 = vpow2.f32 %v1277_v35  ;;  %v1176_v35 = vsub.f32 %v2803_v10, %v2903_v8  ;;  %v2993_v8 = vpop.xlane.xlu0 %1071 }
 0x2c0   : > { %2137 = vpow2.f32 %v1271_v24 }
 0x2c1   : > { %2139 = vpow2.f32 %v1273_v29  ;;  %v1182_v29 = vsub.f32 %v2827_v22, %v2923_v28  ;;  %v1253_v34 = vmul.f32 1.442695, %v1176_v35 }
 0x2c2   : > { %2141 = vpow2.f32 %v1267_v40  ;;  %v736_v10 = vpop.trf.xlu1  ;;  %v1180_v40 = vsub.f32 %v2819_v18, %v2915_v20  ;;  %v1177_v18 = vsub.f32 %v2809_v13, %v2909_v15 }
 0x2c3   : > { %v2963_v31 = vpop.f32.mrf.mxu2  ;;  %v2965_v41 = vpop.f32.mrf.mxu3  ;;  %2143 = vpow2.f32 %v1269_v26  ;;  %v1265_v21 = vmul.f32 1.442695, %v1182_v29  ;;  %2006 = vmatmul.msk.f32.gmra.mxu2 %vm737_vm2, %v736_v10  ;;  %2039 = vmatmul.msk.f32.gmra.mxu3 %vm737_vm2, %v736_v10 }
 0x2c4   : > { %v2967_v44 = vpop.eup %2133  ;;  %v1151_v23 = vmax.f32 %v2963_v31, %v2965_v41  ;;  %2145 = vpow2.f32 %v1251_v33  ;;  %v1255_v10 = vmul.f32 1.442695, %v1177_v18 }
 0x2c5   : > { %v2973_v27 = vpop.eup %2135  ;;  %2147 = vpow2.f32 %v1253_v34 }
 0x2c6   : > { %1128 = vmax.xlane.f32.xlu2 %v1127_v50  ;;  %1152 = vmax.xlane.f32.xlu0 %v1151_v23  ;;  %v1391_v25 = vadd.f32 %v2973_v27, %v2967_v44  ;;  %v2977_v24 = vpop.eup %2137  ;;  %v1263_v50 = vmul.f32 1.442695, %v1181_v32  ;;  %v1179_v23 = vsub.f32 %v2817_v17, %v2915_v20  ;;  %v1261_v17 = vmul.f32 1.442695, %v1180_v40 }
 0x2c7   : > { %v2981_v39 = vpop.eup %2139  ;;  %v1108_v33 = vpop.xlane.xlu0 %1107 }
 0x2c8   : > { %1392 = vadd.xlane.f32.xlu1 %v1391_v25  ;;  %v1388_v9 = vadd.f32 %v2981_v39, %v2977_v24  ;;  %v2997_v22 = vpop.eup %2141  ;;  %2149 = vpow2.f32 %v1263_v50  ;;  %v1121_v25 = vmax.f32 %v2887_v56, %v2889_v59  ;;  %v1259_v32 = vmul.f32 1.442695, %v1179_v23 }
 0x2c9   : > { %v2999_v28 = vpop.eup %2143  ;;  %2151 = vpow2.f32 %v1265_v21  ;;  %v3009_v38 = vpop.xlane.xlu2 %1110  ;;  %v1189_v34 = vsub.f32 %v2855_v36, %v1108_v33  ;;  %v1190_v50 = vsub.f32 %v2857_v37, %v1108_v33 }
 0x2ca   : > { %v1385_v26 = vadd.f32 %v2999_v28, %v2997_v22  ;;  %v3011_v35 = vpop.eup %2145  ;;  %2153 = vpow2.f32 %v1259_v32  ;;  %v1115_v32 = vmax.f32 %v2875_v46, %v2877_v47 }
 0x2cb   : > { %v3013_v29 = vpop.eup %2147  ;;  %2155 = vpow2.f32 %v1261_v17  ;;  %v1279_v13 = vmul.f32 1.442695, %v1189_v34 }
 0x2cc   : > { %v1373_v21 = vadd.f32 %v3013_v29, %v3011_v35  ;;  %2157 = vpow2.f32 %v1255_v10  ;;  %v1174_v10 = vsub.f32 %v2795_v6, %v2897_v3  ;;  %v1172_v6 = vsub.f32 %v2787_v2, %v2891_v60 }
 0x2cd   : > { %v1170_v2 = vsub.f32 %v2779_v62, %v2885_v55 }
 0x2ce   : > { %1125 = vmax.xlane.f32.xlu2 %v1124_v30  ;;  %1389 = vadd.xlane.f32.xlu0 %v1388_v9  ;;  %v3015_v30 = vpop.eup %2149  ;;  %v1178_v9 = vsub.f32 %v2811_v14, %v2909_v15 }
 0x2cf   : > { %v3019_v20 = vpop.eup %2151 }
 0x2d0   : > { %v1382_v23 = vadd.f32 %v3019_v20, %v3015_v30  ;;  %v1257_v40 = vmul.f32 1.442695, %v1178_v9  ;;  %v3029_v14 = vpop.eup %2153 }
 0x2d1   : > { %v3031_v36 = vpop.eup %2155 }
 0x2d2   : > { %2159 = vpow2.f32 %v1257_v40  ;;  %v1379_v17 = vadd.f32 %v3031_v36, %v3029_v14  ;;  %v3039_v33 = vpop.eup %2157 }
 0x2d3   : > { %2161 = vpow2.f32 %v1279_v13  ;;  %v1249_v13 = vmul.f32 1.442695, %v1174_v10 }
 0x2d6   : > { %1122 = vmax.xlane.f32.xlu2 %v1121_v25  ;;  %1386 = vadd.xlane.f32.xlu0 %v1385_v26  ;;  %v1281_v25 = vmul.f32 1.442695, %v1190_v50  ;;  %v1114_v26 = vpop.xlane.xlu2 %1113 }
 0x2d7   : > { %v1193_v37 = vsub.f32 %v2867_v42, %v1114_v26  ;;  %v1194_v15 = vsub.f32 %v2869_v43, %v1114_v26  ;;  %v1173_v43 = vsub.f32 %v2793_v5, %v2897_v3  ;;  %v1171_v5 = vsub.f32 %v2785_v1, %v2891_v60 }
 0x2d8   : > { %2163 = vpow2.f32 %v1281_v25  ;;  %v3041_v9 = vpop.eup %2159  ;;  %v1169_v1 = vsub.f32 %v2777_v61, %v2885_v55  ;;  %v1168_v61 = vsub.f32 %v2771_v58, %v2879_v48 }
 0x2d9   : > { %v1287_v18 = vmul.f32 1.442695, %v1193_v37  ;;  %v1289_v34 = vmul.f32 1.442695, %v1194_v15  ;;  %v3043_v50 = vpop.eup %2161  ;;  %v1247_v40 = vmul.f32 1.442695, %v1173_v43  ;;  %v1118_v37 = vmax.f32 %v2881_v51, %v2883_v52 }
 0x2da   : > { %v1243_v15 = vmul.f32 1.442695, %v1171_v5  ;;  %v1241_v43 = vmul.f32 1.442695, %v1170_v2 }
 0x2db   : > { %2165 = vpow2.f32 %v1287_v18 }
 0x2dc   : > { %2167 = vpow2.f32 %v1289_v34  ;;  %v1239_v34 = vmul.f32 1.442695, %v1169_v1 }
 0x2dd   : > { %2169 = vpow2.f32 %v1247_v40  ;;  %v1237_v40 = vmul.f32 1.442695, %v1168_v61 }
 0x2de   : > { %1374 = vadd.xlane.f32.xlu2 %v1373_v21  ;;  %1383 = vadd.xlane.f32.xlu0 %v1382_v23  ;;  %v3045_v42 = vpop.eup %2163  ;;  %v1376_v23 = vadd.f32 %v3041_v9, %v3039_v33  ;;  %2171 = vpow2.f32 %v1249_v13 }
 0x2df   : > { %v1394_v21 = vadd.f32 %v3045_v42, %v3043_v50  ;;  %2173 = vpow2.f32 %v1243_v15 }
 0x2e1   : > { %v3055_v25 = vpop.eup %2165 }
 0x2e2   : > { %v3057_v26 = vpop.eup %2167 }
 0x2e3   : > { %v1400_v3 = vadd.f32 %v3057_v26, %v3055_v25 }
 0x2e6   : > { %1116 = vmax.xlane.f32.xlu2 %v1115_v32  ;;  %1380 = vadd.xlane.f32.xlu0 %v1379_v17  ;;  %v1245_v32 = vmul.f32 1.442695, %v1172_v6  ;;  %v3067_v17 = vpop.eup %2169  ;;  %v1165_v6 = vsub.f32 %v2761_v53, %v2993_v8  ;;  %v1163_v53 = vsub.f32 %v2753_v49, %v2873_v45 }
 0x2e7   : > { %v3069_v18 = vpop.eup %2171 }
 0x2e8   : > { %2175 = vpow2.f32 %v1245_v32  ;;  %v1370_v60 = vadd.f32 %v3069_v18, %v3067_v17  ;;  %v3077_v10 = vpop.eup %2173  ;;  %v575_v32 = vld [vmem:[%s3786_s6] sm:$0xff]  ;;  %v1227_v2 = vmul.f32 1.442695, %v1163_v53 }
 0x2e9   : > { %2177 = vpow2.f32 %v1239_v34  ;;  %1966 = vmatmul.msk.f32.vlgmr.msra.gmra.mxu0 %vm481_vm0, %v575_v32  ;;  %1970 = vmatmul.msk.f32.vlgmr.msra.gmra.mxu1 %vm481_vm0, %v575_v32 }
 0x2ea   : > { %2179 = vpow2.f32 %v1241_v43 }
 0x2ee   : > { %1395 = vadd.xlane.f32.xlu2 %v1394_v21  ;;  %1377 = vadd.xlane.f32.xlu0 %v1376_v23  ;;  %v3079_v21 = vpop.eup %2175  ;;  %v1167_v23 = vsub.f32 %v2769_v57, %v2879_v48  ;;  %v1166_v57 = vsub.f32 %v2763_v54, %v2993_v8  ;;  %v1231_v48 = vmul.f32 1.442695, %v1165_v6  ;;  %v3855_v54 = vld [vmem:[#allocation21_spill] sm:$0xff] }
 0x2ef   : > { %v1367_v62 = vadd.f32 %v3079_v21, %v3077_v10  ;;  %v3087_v13 = vpop.eup %2177  ;;  %v1164_v8 = vsub.f32 %v3855_v54, %v2873_v45 }
 0x2f0   : > { %v1235_v55 = vmul.f32 1.442695, %v1167_v23  ;;  %v3089_v5 = vpop.eup %2179 }
 0x2f1   : > { %v1364_v58 = vadd.f32 %v3089_v5, %v3087_v13 }
 0x2f2   : > { %2181 = vpow2.f32 %v1235_v55 }
 0x2f3   : > { %2183 = vpow2.f32 %v1237_v40 }
 0x2f4   : > { %2185 = vpow2.f32 %v1231_v48 }
 0x2f6   : > { %1401 = vadd.xlane.f32.xlu2 %v1400_v3  ;;  %1119 = vmax.xlane.f32.xlu0 %v1118_v37  ;;  %v1233_v3 = vmul.f32 1.442695, %v1166_v57 }
 0x2f8   : > { %v3097_v37 = vpop.eup %2181  ;;  %2187 = vpow2.f32 %v1233_v3  ;;  %v579_v3 = vld [vmem:[%s3787_s7] sm:$0xff] }
 0x2f9   : > { %v3099_v15 = vpop.eup %2183  ;;  %2189 = vpow2.f32 %v1227_v2 }
 0x2fa   : > { %v1361_v1 = vadd.f32 %v3099_v15, %v3097_v37  ;;  %v3114_v43 = vpop.eup %2185 }
 0x2fe   : > { %1371 = vadd.xlane.f32.xlu0 %v1370_v60  ;;  %v1229_v60 = vmul.f32 1.442695, %v1164_v8  ;;  %v3116_v49 = vpop.eup %2187 }
 0x2ff   : > { %v1358_v23 = vadd.f32 %v3116_v49, %v3114_v43  ;;  %v3120_v45 = vpop.eup %2189 }
 0x300   : > { %2191 = vpow2.f32 %v1229_v60 }
 0x306   : > { %1368 = vadd.xlane.f32.xlu0 %v1367_v62  ;;  %v3122_v61 = vpop.eup %2191 }
 0x307   : > { %v1355_v40 = vadd.f32 %v3122_v61, %v3120_v45 }
 0x30e   : > { %1365 = vadd.xlane.f32.xlu0 %v1364_v58 }
 0x311   : > { %v3112_v34 = vpop.xlane.xlu0 %1137 }
 0x316   : > { %1362 = vadd.xlane.f32.xlu0 %v1361_v1 }
 0x319   : > { %v1141_v62 = vpop.xlane.xlu0 %1140 }
 0x31e   : > { %1359 = vadd.xlane.f32.xlu0 %v1358_v23 }
 0x321   : > { %v3124_v55 = vpop.xlane.xlu2 %1143 }
 0x326   : > { %1356 = vadd.xlane.f32.xlu0 %v1355_v40 }
 0x329   : > { %v1135_v6 = vpop.xlane.xlu2 %1134  ;;  %v3128_v57 = vpop.xlane.xlu0 %1146 }
 0x331   : > { %v1132_v58 = vpop.xlane.xlu2 %1131  ;;  %v3130_v48 = vpop.xlane.xlu0 %1149 }
 0x332   : > { %v1205_v2 = vsub.f32 %v2905_v11, %v1132_v58  ;;  %v1206_v40 = vsub.f32 %v2907_v12, %v1132_v58 }
 0x334   : > { %v1311_v52 = vmul.f32 1.442695, %v1205_v2  ;;  %v1313_v51 = vmul.f32 1.442695, %v1206_v40  ;;  %v3859_v40 = vld [vmem:[#allocation34_spill] sm:$0xff] }
 0x339   : > { %v1129_v32 = vpop.xlane.xlu2 %1128  ;;  %v3135_v53 = vpop.xlane.xlu0 %1152 }
 0x33a   : > { %v1203_v54 = vsub.f32 %v2899_v4, %v1129_v32  ;;  %v1204_v8 = vsub.f32 %v2901_v7, %v1129_v32  ;;  %585 = vperm.xlu0 %2130, %v579_v3   ;;  %v3856_v32 = vld [vmem:[#allocation30_spill] sm:$0xff] }
 0x33b   : > { %v1393_v1 = vpop.xlane.xlu1 %1392  ;;  %v1207_v12 = vsub.f32 %v3856_v32, %v1135_v6  ;;  %v3860_v32 = vld [vmem:[#allocation35_spill] sm:$0xff] }
 0x33c   : > { %v1307_v60 = vmul.f32 1.442695, %v1203_v54  ;;  %v1309_v23 = vmul.f32 1.442695, %v1204_v8  ;;  %2193 = vrcp.f32 %v1393_v1  ;;  %v3857_v54 = vld [vmem:[#allocation31_spill] sm:$0xff] }
 0x33d   : > { %v1208_v8 = vsub.f32 %v3857_v54, %v1135_v6 }
 0x33e   : > { %2195 = vpow2.f32 %v1307_v60 }
 0x33f   : > { %2197 = vpow2.f32 %v1309_v23 }
 0x341   : > { %v3142_v47 = vpop.xlane.xlu2 %1125  ;;  %v1390_v46 = vpop.xlane.xlu0 %1389 }
 0x342   : > { %v2194_v4 = vpop.eup %2193  ;;  %2199 = vrcp.f32 %v1390_v46 }
 0x343   : > { %v3145_v7 = vmul.f32 %v2194_v4, %v2967_v44  ;;  %v3148_v11 = vmul.f32 %v2194_v4, %v2973_v27  ;;  %2201 = vpow2.f32 %v1311_v52  ;;  %v1315_v52 = vmul.f32 1.442695, %v1207_v12 }
 0x344   : > { %v3150_v3 = vpop.eup %2195  ;;  %2203 = vpow2.f32 %v1313_v51  ;;  %v1317_v27 = vmul.f32 1.442695, %v1208_v8  ;;  %v1211_v4 = vsub.f32 %v3859_v40, %v1141_v62  ;;  %v1212_v12 = vsub.f32 %v3860_v32, %v1141_v62 }
 0x345   : > { %v3153_v58 = vpop.eup %2197  ;;  %1571 = vst [vmem:[%s3156_s23 + $0xc0] sm:$0xff] %v3145_v7 }
 0x346   : > { %v1415_v46 = vadd.f32 %v3153_v58, %v3150_v3  ;;  %1572 = vst [vmem:[%s3156_s23 + $0xc8] sm:$0xff] %v3148_v11  ;;  %v1323_v54 = vmul.f32 1.442695, %v1211_v4  ;;  %v1325_v8 = vmul.f32 1.442695, %v1212_v12 }
 0x348   : > { %v2200_v44 = vpop.eup %2199  ;;  %1416 = vadd.xlane.f32.xlu2 %v1415_v46 }
 0x349   : > { %v3164_v1 = vpop.xlane.xlu2 %1122  ;;  %v1387_v51 = vpop.xlane.xlu0 %1386  ;;  %v3167_v6 = vmul.f32 %v2200_v44, %v2977_v24  ;;  %v3170_v2 = vmul.f32 %v2200_v44, %v2981_v39 }
 0x34a   : > { %3858 = vst [vmem:[#allocation21_spill] sm:$0xff] %v3164_v1  ;;  %v3172_v60 = vpop.eup %2201  ;;  %2205 = vrcp.f32 %v1387_v51 }
 0x34b   : > { %v3174_v23 = vpop.eup %2203  ;;  %1569 = vst [vmem:[%s3156_s23 + $0xb0] sm:$0xff] %v3167_v6  ;;  %2207 = vpow2.f32 %v1315_v52 }
 0x34c   : > { %1570 = vst [vmem:[%s3156_s23 + $0xb8] sm:$0xff] %v3170_v2  ;;  %2209 = vpow2.f32 %v1317_v27  ;;  %v1418_v24 = vadd.f32 %v3174_v23, %v3172_v60  ;;  %v3861_v27 = vld [vmem:[#allocation36_spill] sm:$0xff] }
 0x34d   : > { %v1213_v4 = vsub.f32 %v3861_v27, %v3124_v55 }
 0x350   : > { %v2206_v39 = vpop.eup %2205  ;;  %1419 = vadd.xlane.f32.xlu2 %v1418_v24  ;;  %v1327_v24 = vmul.f32 1.442695, %v1213_v4 }
 0x351   : > { %v1375_v46 = vpop.xlane.xlu2 %1374  ;;  %v1384_v44 = vpop.xlane.xlu0 %1383  ;;  %v3185_v51 = vmul.f32 %v2206_v39, %v2997_v22  ;;  %v3188_v52 = vmul.f32 %v2206_v39, %v2999_v28  ;;  %v3862_v22 = vld [vmem:[#allocation37_spill] sm:$0xff] }
 0x352   : > { %v3190_v40 = vpop.eup %2207  ;;  %2211 = vrcp.f32 %v1375_v46  ;;  %v1214_v32 = vsub.f32 %v3862_v22, %v3124_v55 }
 0x353   : > { %v3192_v62 = vpop.eup %2209  ;;  %2213 = vrcp.f32 %v1384_v44  ;;  %1567 = vst [vmem:[%s3156_s23 + $0xa0] sm:$0xff] %v3185_v51 }
 0x354   : > { %2215 = vpow2.f32 %v1323_v54  ;;  %1568 = vst [vmem:[%s3156_s23 + $0xa8] sm:$0xff] %v3188_v52  ;;  %v1421_v28 = vadd.f32 %v3192_v62, %v3190_v40  ;;  %v1329_v46 = vmul.f32 1.442695, %v1214_v32  ;;  %v3219_v32 = vpop.f32.mrf.mxu3 }
 0x355   : > { %2217 = vpow2.f32 %v1325_v8 }
 0x358   : > { %v2212_v12 = vpop.eup %2211  ;;  %1422 = vadd.xlane.f32.xlu2 %v1421_v28  ;;  %v3221_v28 = vpop.f32.mrf.mxu2 }
 0x359   : > { %v2214_v39 = vpop.eup %2213  ;;  %v3204_v54 = vpop.xlane.xlu2 %1116  ;;  %v3207_v27 = vmul.f32 %v2212_v12, %v3011_v35  ;;  %v3215_v4 = vmul.f32 %v2212_v12, %v3013_v29  ;;  %v3867_v35 = vld [vmem:[#allocation38_spill] sm:$0xff]  ;;  %v3868_v29 = vld [vmem:[#allocation39_spill] sm:$0xff] }
 0x35a   : > { %3863 = vst [vmem:[#allocation30_spill] sm:$0xff] %v3204_v54  ;;  %v1381_v44 = vpop.xlane.xlu0 %1380  ;;  %v3209_v8 = vpop.eup %2215  ;;  %v3212_v55 = vmul.f32 %v2214_v39, %v3015_v30  ;;  %v3224_v54 = vmul.f32 %v2214_v39, %v3019_v20  ;;  %v1216_v30 = vsub.f32 %v3868_v29, %v3128_v57 }
 0x35b   : > { %3864 = vst [vmem:[#allocation31_spill] sm:$0xff] %v3207_v27  ;;  %2219 = vrcp.f32 %v1381_v44  ;;  %v3217_v22 = vpop.eup %2217  ;;  %v1215_v44 = vsub.f32 %v3867_v35, %v3128_v57  ;;  %v3870_v35 = vld [vmem:[#allocation23_spill] sm:$0xff] }
 0x35c   : > { %3865 = vst [vmem:[#allocation34_spill] sm:$0xff] %v3215_v4  ;;  %2221 = vpow2.f32 %v1327_v24  ;;  %v1427_v12 = vadd.f32 %v3217_v22, %v3209_v8  ;;  %v3869_v24 = vld [vmem:[#allocation22_spill] sm:$0xff]  ;;  %v1192_v57 = vsub.f32 %v3870_v35, %v3009_v38  ;;  %v1333_v29 = vmul.f32 1.442695, %v1216_v30  ;;  %v3264_v30 = vpop.f32.mrf.mxu3 }
 0x35d   : > { %3866 = vst [vmem:[#allocation35_spill] sm:$0xff] %v3224_v54  ;;  %2223 = vpow2.f32 %v1329_v46  ;;  %v1191_v39 = vsub.f32 %v3869_v24, %v3009_v38  ;;  %v1331_v59 = vmul.f32 1.442695, %v1215_v44  ;;  %v1154_v46 = vmax.f32 %v3221_v28, %v3219_v32 }
 0x35e   : > { %1559 = vst [vmem:[%s3156_s23 + $0x60] sm:$0xff] %v3207_v27  ;;  %v1217_v38 = vsub.f32 %v2951_v19, %v3130_v48 }
 0x35f   : > { %1565 = vst [vmem:[%s3156_s23 + $0x90] sm:$0xff] %v3212_v55 }
 0x360   : > { %1566 = vst [vmem:[%s3156_s23 + $0x98] sm:$0xff] %v3224_v54  ;;  %1428 = vadd.xlane.f32.xlu2 %v1427_v12  ;;  %v1283_v12 = vmul.f32 1.442695, %v1191_v39 }
 0x361   : > { %1560 = vst [vmem:[%s3156_s23 + $0x68] sm:$0xff] %v3215_v4  ;;  %v2220_v20 = vpop.eup %2219  ;;  %v1396_v56 = vpop.xlane.xlu2 %1395 }
 0x362   : > { %v1378_v1 = vpop.xlane.xlu0 %1377  ;;  %v3247_v27 = vmul.f32 %v2220_v20, %v3029_v14  ;;  %v3250_v4 = vmul.f32 %v2220_v20, %v3031_v36  ;;  %v3252_v54 = vpop.eup %2221  ;;  %2225 = vrcp.f32 %v1396_v56  ;;  %v1285_v14 = vmul.f32 1.442695, %v1192_v57 }
 0x363   : > { %v3254_v44 = vpop.eup %2223  ;;  %2227 = vrcp.f32 %v1378_v1  ;;  %v1218_v36 = vsub.f32 %v2953_v16, %v3130_v48  ;;  %v3266_v56 = vpop.f32.mrf.mxu2 }
 0x364   : > { %1563 = vst [vmem:[%s3156_s23 + $0x80] sm:$0xff] %v3247_v27  ;;  %2229 = vpow2.f32 %v1331_v59  ;;  %1155 = vmax.xlane.f32.xlu0 %v1154_v46  ;;  %v1430_v1 = vadd.f32 %v3254_v44, %v3252_v54  ;;  %v1335_v59 = vmul.f32 1.442695, %v1217_v38  ;;  %v1157_v19 = vmax.f32 %v3266_v56, %v3264_v30 }
 0x365   : > { %1564 = vst [vmem:[%s3156_s23 + $0x88] sm:$0xff] %v3250_v4  ;;  %2231 = vpow2.f32 %v1333_v29  ;;  %v1337_v39 = vmul.f32 1.442695, %v1218_v36  ;;  %v3873_v36 = vld [vmem:[#allocation32_spill] sm:$0xff] }
 0x366   : > { %2233 = vpow2.f32 %v1283_v12 }
 0x367   : > { %2235 = vpow2.f32 %v1285_v14 }
 0x368   : > { %v2226_v20 = vpop.eup %2225  ;;  %1431 = vadd.xlane.f32.xlu2 %v1430_v1  ;;  %v1209_v1 = vsub.f32 %v3873_v36, %v3112_v34 }
 0x369   : > { %v2228_v24 = vpop.eup %2227  ;;  %v1402_v16 = vpop.xlane.xlu2 %1401  ;;  %v3275_v46 = vmul.f32 %v2226_v20, %v3043_v50  ;;  %v3278_v35 = vmul.f32 %v2226_v20, %v3045_v42  ;;  %v1219_v50 = vsub.f32 %v2963_v31, %v3135_v53  ;;  %v1220_v42 = vsub.f32 %v2965_v41, %v3135_v53  ;;  %v3874_v41 = vld [vmem:[#allocation33_spill] sm:$0xff] }
 0x36a   : > { %v3272_v48 = vpop.xlane.xlu0 %1119  ;;  %v3280_v57 = vpop.eup %2229  ;;  %2237 = vrcp.f32 %v1402_v16  ;;  %v3283_v29 = vmul.f32 %v2228_v24, %v3039_v33  ;;  %v3290_v38 = vmul.f32 %v2228_v24, %v3041_v9  ;;  %v1210_v53 = vsub.f32 %v3874_v41, %v3112_v34 }
 0x36b   : > { %3871 = vst [vmem:[#allocation36_spill] sm:$0xff] %v3272_v48  ;;  %v3285_v12 = vpop.eup %2231  ;;  %2239 = vpow2.f32 %v1335_v59  ;;  %v1339_v20 = vmul.f32 1.442695, %v1219_v50  ;;  %v1341_v59 = vmul.f32 1.442695, %v1220_v42 }
 0x36c   : > { %1573 = vst [vmem:[%s3156_s23 + $0xd0] sm:$0xff] %v3275_v46  ;;  %1158 = vmax.xlane.f32.xlu0 %v1157_v19  ;;  %2241 = vpow2.f32 %v1337_v39  ;;  %v3300_v33 = vpop.eup %2233  ;;  %v1433_v14 = vadd.f32 %v3285_v12, %v3280_v57  ;;  %v1319_v50 = vmul.f32 1.442695, %v1209_v1  ;;  %v1321_v34 = vmul.f32 1.442695, %v1210_v53 }
 0x36d   : > { %3872 = vst [vmem:[#allocation37_spill] sm:$0xff] %v3290_v38  ;;  %v3306_v9 = vpop.eup %2235 }
 0x36e   : > { %1574 = vst [vmem:[%s3156_s23 + $0xd8] sm:$0xff] %v3278_v35  ;;  %v1397_v48 = vadd.f32 %v3306_v9, %v3300_v33 }
 0x36f   : > { %1561 = vst [vmem:[%s3156_s23 + $0x70] sm:$0xff] %v3283_v29 }
 0x370   : > { %1562 = vst [vmem:[%s3156_s23 + $0x78] sm:$0xff] %v3290_v38  ;;  %v2238_v31 = vpop.eup %2237  ;;  %1434 = vadd.xlane.f32.xlu2 %v1433_v14 }
 0x371   : > { %v1513_v24 = vmul.f32 %v2238_v31, %v3055_v25  ;;  %v1514_v39 = vmul.f32 %v2238_v31, %v3057_v26  ;;  %v3314_v16 = vpop.eup %2239  ;;  %v3322_v25 = vpop.f32.mrf.mxu3 }
 0x372   : > { %v1372_v19 = vpop.xlane.xlu0 %1371  ;;  %v3318_v38 = vpop.eup %2241 }
 0x373   : > { %2243 = vrcp.f32 %v1372_v19  ;;  %1577 = vst [vmem:[%s3156_s23 + $0xf0] sm:$0xff] %v1513_v24  ;;  %1611 = vmatpush.xpose.msrb.mxu0 %v1513_v24  ;;  %1640 = vmatpush.xpose.msrb.mxu1 %v1514_v39  ;;  %v3324_v26 = vpop.f32.mrf.mxu2  ;;  %v1436_v42 = vadd.f32 %v3318_v38, %v3314_v16 }
 0x374   : > { %2245 = vpow2.f32 %v1339_v20  ;;  %1578 = vst [vmem:[%s3156_s23 + $0xf8] sm:$0xff] %v1514_v39  ;;  %1398 = vadd.xlane.f32.xlu0 %v1397_v48  ;;  %v1160_v31 = vmax.f32 %v3324_v26, %v3322_v25 }
 0x375   : > { %2247 = vpow2.f32 %v1341_v59 }
 0x376   : > { %2249 = vpow2.f32 %v1319_v50 }
 0x377   : > { %2251 = vpow2.f32 %v1321_v34 }
 0x378   : > { %1437 = vadd.xlane.f32.xlu2 %v1436_v42 }
 0x379   : > { %v2244_v14 = vpop.eup %2243 }
 0x37a   : > { %v1369_v36 = vpop.xlane.xlu0 %1368  ;;  %v3331_v48 = vmul.f32 %v2244_v14, %v3067_v17  ;;  %v3334_v1 = vmul.f32 %v2244_v14, %v3069_v18  ;;  %v3336_v20 = vpop.eup %2245 }
 0x37b   : > { %2253 = vrcp.f32 %v1369_v36  ;;  %v3338_v41 = vpop.eup %2247 }
 0x37c   : > { %1557 = vst [vmem:[%s3156_s23 + $0x50] sm:$0xff] %v3331_v48  ;;  %1161 = vmax.xlane.f32.xlu0 %v1160_v31  ;;  %v3344_v53 = vpop.eup %2249  ;;  %v1439_v17 = vadd.f32 %v3338_v41, %v3336_v20 }
 0x37d   : > { %1558 = vst [vmem:[%s3156_s23 + $0x58] sm:$0xff] %v3334_v1  ;;  %v3348_v59 = vpop.eup %2251 }
 0x37e   : > { %v1424_v50 = vadd.f32 %v3348_v59, %v3344_v53 }
 0x380   : > { %1440 = vadd.xlane.f32.xlu2 %v1439_v17 }
 0x381   : > { %v2254_v18 = vpop.eup %2253 }
 0x382   : > { %v1366_v19 = vpop.xlane.xlu0 %1365  ;;  %v3351_v24 = vmul.f32 %v2254_v18, %v3077_v10  ;;  %v3354_v39 = vmul.f32 %v2254_v18, %v3079_v21 }
 0x383   : > { %2255 = vrcp.f32 %v1366_v19 }
 0x384   : > { %1555 = vst [vmem:[%s3156_s23 + $0x40] sm:$0xff] %v3351_v24  ;;  %1425 = vadd.xlane.f32.xlu0 %v1424_v50 }
 0x385   : > { %1556 = vst [vmem:[%s3156_s23 + $0x48] sm:$0xff] %v3354_v39 }
 0x389   : > { %v2256_v34 = vpop.eup %2255 }
 0x38a   : > { %v1363_v42 = vpop.xlane.xlu0 %1362  ;;  %v3363_v14 = vmul.f32 %v2256_v34, %v3087_v13  ;;  %v3366_v10 = vmul.f32 %v2256_v34, %v3089_v5 }
 0x38b   : > { %2257 = vrcp.f32 %v1363_v42 }
 0x38c   : > { %1553 = vst [vmem:[%s3156_s23 + $0x30] sm:$0xff] %v3363_v14 }
 0x38d   : > { %1554 = vst [vmem:[%s3156_s23 + $0x38] sm:$0xff] %v3366_v10 }
 0x391   : > { %v2258_v21 = vpop.eup %2257 }
 0x392   : > { %v1360_v31 = vpop.xlane.xlu0 %1359  ;;  %v3373_v36 = vmul.f32 %v2258_v21, %v3097_v37  ;;  %v3376_v13 = vmul.f32 %v2258_v21, %v3099_v15 }
 0x393   : > { %2259 = vrcp.f32 %v1360_v31 }
 0x394   : > { %1551 = vst [vmem:[%s3156_s23 + $0x20] sm:$0xff] %v3373_v36 }
 0x395   : > { %1552 = vst [vmem:[%s3156_s23 + $0x28] sm:$0xff] %v3376_v13 }
 0x399   : > { %v2260_v5 = vpop.eup %2259 }
 0x39a   : > { %v1357_v17 = vpop.xlane.xlu0 %1356  ;;  %v3383_v18 = vmul.f32 %v2260_v5, %v3114_v43  ;;  %v3386_v19 = vmul.f32 %v2260_v5, %v3116_v49 }
 0x39b   : > { %2261 = vrcp.f32 %v1357_v17 }
 0x39c   : > { %1549 = vst [vmem:[%s3156_s23 + $0x10] sm:$0xff] %v3383_v18 }
 0x39d   : > { %1550 = vst [vmem:[%s3156_s23 + $0x18] sm:$0xff] %v3386_v19 }
 0x3a1   : > { %v2262_v37 = vpop.eup %2261 }
 0x3a2   : > { %v3393_v15 = vmul.f32 %v2262_v37, %v3120_v45  ;;  %v3396_v50 = vmul.f32 %v2262_v37, %v3122_v61 }
 0x3a4   : > { %1547 = vst [vmem:[%s3156_s23] sm:$0xff] %v3393_v15 }
 0x3a5   : > { %1548 = vst [vmem:[%s3156_s23 + $0x8] sm:$0xff] %v3396_v50 }
 0x3bb   : > { %v1417_v43 = vpop.xlane.xlu2 %1416 }
 0x3bc   : > { %2263 = vrcp.f32 %v1417_v43 }
 0x3c2   : > { %v2264_v49 = vpop.eup %2263 }
 0x3c3   : > { %v1420_v34 = vpop.xlane.xlu2 %1419  ;;  %v3403_v42 = vmul.f32 %v2264_v49, %v3150_v3  ;;  %v3406_v21 = vmul.f32 %v2264_v49, %v3153_v58  ;;  %v3422_v3 = vpop.permute.xlu0 %585 }
 0x3c4   : > { %2265 = vrcp.f32 %v1420_v34  ;;  %v1201_v34 = vsub.f32 %v2893_v63, %v3142_v47 }
 0x3c5   : > { %3875 = vst [vmem:[#allocation38_spill] sm:$0xff] %v3406_v21 }
 0x3c6   : > { %1587 = vst [vmem:[%s3156_s23 + $0x140] sm:$0xff] %v3403_v42  ;;  %v1303_v63 = vmul.f32 1.442695, %v1201_v34 }
 0x3c7   : > { %1588 = vst [vmem:[%s3156_s23 + $0x148] sm:$0xff] %v3406_v21 }
 0x3ca   : > { %v2266_v45 = vpop.eup %2265 }
 0x3cb   : > { %v1423_v61 = vpop.xlane.xlu2 %1422  ;;  %v3413_v31 = vmul.f32 %v2266_v45, %v3172_v60  ;;  %v3416_v5 = vmul.f32 %v2266_v45, %v3174_v23  ;;  %v576_v60 = vld [vmem:[%s3786_s6 + $0x8] sm:$0xff] }
 0x3cc   : > { %2267 = vrcp.f32 %v1423_v61  ;;  %1967 = vmatmul.msk.f32.gmra.mxu0 %vm481_vm0, %v576_v60  ;;  %1971 = vmatmul.msk.f32.gmra.mxu1 %vm481_vm0, %v576_v60  ;;  %v577_v60 = vld [vmem:[%s3786_s6 + $0x10] sm:$0xff] }
 0x3cd   : > { %1589 = vst [vmem:[%s3156_s23 + $0x150] sm:$0xff] %v3413_v31 }
 0x3ce   : > { %1590 = vst [vmem:[%s3156_s23 + $0x158] sm:$0xff] %v3416_v5 }
 0x3d2   : > { %v2268_v58 = vpop.eup %2267 }
 0x3d3   : > { %v1429_v17 = vpop.xlane.xlu2 %1428  ;;  %v3425_v37 = vmul.f32 %v2268_v58, %v3190_v40  ;;  %v3428_v43 = vmul.f32 %v2268_v58, %v3192_v62  ;;  %v1202_v58 = vsub.f32 %v2895_v0, %v3142_v47 }
 0x3d4   : > { %2269 = vrcp.f32 %v1429_v17  ;;  %1968 = vmatmul.msk.f32.gmra.mxu0 %vm481_vm0, %v577_v60  ;;  %1972 = vmatmul.msk.f32.gmra.mxu1 %vm481_vm0, %v577_v60 }
 0x3d5   : > { %1591 = vst [vmem:[%s3156_s23 + $0x160] sm:$0xff] %v3425_v37  ;;  %v1305_v47 = vmul.f32 1.442695, %v1202_v58 }
 0x3d6   : > { %1592 = vst [vmem:[%s3156_s23 + $0x168] sm:$0xff] %v3428_v43 }
 0x3d7   : > { %v1156_v23 = vpop.xlane.xlu0 %1155 }
 0x3d8   : > { %v1221_v40 = vsub.f32 %v3221_v28, %v1156_v23  ;;  %v1222_v62 = vsub.f32 %v3219_v32, %v1156_v23 }
 0x3da   : > { %v2270_v49 = vpop.eup %2269  ;;  %v1343_v45 = vmul.f32 1.442695, %v1221_v40  ;;  %v1345_v61 = vmul.f32 1.442695, %v1222_v62 }
 0x3db   : > { %v1432_v17 = vpop.xlane.xlu2 %1431  ;;  %v3449_v21 = vmul.f32 %v2270_v49, %v3209_v8  ;;  %v3452_v32 = vmul.f32 %v2270_v49, %v3217_v22 }
 0x3dc   : > { %2271 = vpow2.f32 %v1343_v45 }
 0x3dd   : > { %2273 = vpow2.f32 %v1345_v61  ;;  %1595 = vst [vmem:[%s3156_s23 + $0x180] sm:$0xff] %v3449_v21 }
 0x3de   : > { %2275 = vrcp.f32 %v1432_v17  ;;  %1596 = vst [vmem:[%s3156_s23 + $0x188] sm:$0xff] %v3452_v32 }
 0x3df   : > { %v1159_v0 = vpop.xlane.xlu0 %1158  ;;  %2277 = vpow2.f32 %v1303_v63 }
 0x3e0   : > { %v1223_v8 = vsub.f32 %v3266_v56, %v1159_v0  ;;  %v1224_v28 = vsub.f32 %v3264_v30, %v1159_v0  ;;  %2279 = vpow2.f32 %v1305_v47 }
 0x3e2   : > { %v3462_v22 = vpop.eup %2271  ;;  %v1347_v23 = vmul.f32 1.442695, %v1223_v8  ;;  %v1349_v40 = vmul.f32 1.442695, %v1224_v28 }
 0x3e3   : > { %v3464_v62 = vpop.eup %2273  ;;  %v1435_v49 = vpop.xlane.xlu2 %1434 }
 0x3e4   : > { %v2276_v34 = vpop.eup %2275  ;;  %2281 = vpow2.f32 %v1347_v23  ;;  %v1442_v45 = vadd.f32 %v3464_v62, %v3462_v22 }
 0x3e5   : > { %2283 = vpow2.f32 %v1349_v40  ;;  %v3469_v56 = vmul.f32 %v2276_v34, %v3252_v54  ;;  %v3472_v30 = vmul.f32 %v2276_v34, %v3254_v44  ;;  %v3476_v58 = vpop.eup %2277 }
 0x3e6   : > { %2285 = vrcp.f32 %v1435_v49  ;;  %1443 = vadd.xlane.f32.xlu2 %v1442_v45  ;;  %v3480_v17 = vpop.eup %2279 }
 0x3e7   : > { %v1399_v61 = vpop.xlane.xlu0 %1398  ;;  %1597 = vst [vmem:[%s3156_s23 + $0x190] sm:$0xff] %v3469_v56  ;;  %v1412_v47 = vadd.f32 %v3480_v17, %v3476_v58 }
 0x3e8   : > { %2287 = vrcp.f32 %v1399_v61  ;;  %1598 = vst [vmem:[%s3156_s23 + $0x198] sm:$0xff] %v3472_v30 }
 0x3ea   : > { %v3482_v60 = vpop.eup %2281 }
 0x3eb   : > { %v3484_v54 = vpop.eup %2283  ;;  %v1438_v63 = vpop.xlane.xlu2 %1437 }
 0x3ec   : > { %v2286_v44 = vpop.eup %2285  ;;  %2289 = vrcp.f32 %v1438_v63  ;;  %v1445_v0 = vadd.f32 %v3484_v54, %v3482_v60 }
 0x3ed   : > { %v3491_v8 = vmul.f32 %v2286_v44, %v3280_v57  ;;  %v3494_v28 = vmul.f32 %v2286_v44, %v3285_v12 }
 0x3ee   : > { %v2288_v23 = vpop.eup %2287  ;;  %1413 = vadd.xlane.f32.xlu2 %v1412_v47  ;;  %1446 = vadd.xlane.f32.xlu0 %v1445_v0  ;;  %v580_v47 = vld [vmem:[%s3787_s7 + $0x8] sm:$0xff] }
 0x3ef   : > { %v1162_v40 = vpop.xlane.xlu0 %1161  ;;  %v1511_v49 = vmul.f32 %v2288_v23, %v3300_v33  ;;  %v1512_v34 = vmul.f32 %v2288_v23, %v3306_v9  ;;  %1599 = vst [vmem:[%s3156_s23 + $0x1a0] sm:$0xff] %v3491_v8 }
 0x3f0   : > { %v1225_v45 = vsub.f32 %v3324_v26, %v1162_v40  ;;  %v1226_v61 = vsub.f32 %v3322_v25, %v1162_v40  ;;  %1600 = vst [vmem:[%s3156_s23 + $0x1a8] sm:$0xff] %v3494_v28 }
 0x3f1   : > { %1575 = vst [vmem:[%s3156_s23 + $0xe0] sm:$0xff] %v1511_v49  ;;  %1612 = vmatpush.xpose.msrb.mxu0 %v1511_v49  ;;  %1641 = vmatpush.xpose.msrb.mxu1 %v1512_v34 }
 0x3f2   : > { %v2290_v57 = vpop.eup %2289  ;;  %v1351_v12 = vmul.f32 1.442695, %v1225_v45  ;;  %v1353_v63 = vmul.f32 1.442695, %v1226_v61  ;;  %1576 = vst [vmem:[%s3156_s23 + $0xe8] sm:$0xff] %v1512_v34  ;;  %v3885_v34 = vld [vmem:[#allocation25_spill] sm:$0xff]  ;;  %v632_v61 = vpop.f32.mrf.mxu0 }
 0x3f3   : > { %v1441_v33 = vpop.xlane.xlu2 %1440  ;;  %v3507_v9 = vmul.f32 %v2290_v57, %v3314_v16  ;;  %v3510_v44 = vmul.f32 %v2290_v57, %v3318_v38  ;;  %v661_v57 = vpop.f32.mrf.mxu1 }
 0x3f4   : > { %2291 = vpow2.f32 %v1351_v12 }
 0x3f5   : > { %2293 = vpow2.f32 %v1353_v63  ;;  %1613 = vmatpush.xpose.msrb.mxu0 %v3275_v46  ;;  %1642 = vmatpush.xpose.msrb.mxu1 %v3278_v35  ;;  %1601 = vst [vmem:[%s3156_s23 + $0x1b0] sm:$0xff] %v3507_v9  ;;  %v3601_v63 = vadd.f32 %v661_v57, %v3422_v3 }
 0x3f6   : > { %2295 = vrcp.f32 %v1441_v33  ;;  %1602 = vst [vmem:[%s3156_s23 + $0x1b8] sm:$0xff] %v3510_v44  ;;  %v3888_v33 = vld [vmem:[#allocation27_spill] sm:$0xff] }
 0x3f7   : > { %v1426_v25 = vpop.xlane.xlu0 %1425 }
 0x3f8   : > { %2297 = vrcp.f32 %v1426_v25 }
 0x3f9   : > { %1614 = vmatpush.xpose.msrb.mxu0 %v3145_v7  ;;  %1643 = vmatpush.xpose.msrb.mxu1 %v3148_v11 }
 0x3fa   : > { %v3520_v38 = vpop.eup %2291 }
 0x3fb   : > { %v3522_v16 = vpop.eup %2293 }
 0x3fc   : > { %v2296_v46 = vpop.eup %2295  ;;  %v1448_v35 = vadd.f32 %v3522_v16, %v3520_v38 }
 0x3fd   : > { %1615 = vmatpush.xpose.msrb.mxu0 %v3167_v6  ;;  %1644 = vmatpush.xpose.msrb.mxu1 %v3170_v2  ;;  %v3529_v26 = vmul.f32 %v2296_v46, %v3336_v20  ;;  %v3532_v7 = vmul.f32 %v2296_v46, %v3338_v41  ;;  %v578_v2 = vld [vmem:[%s3786_s6 + $0x18] sm:$0xff]  ;;  %v3879_v41 = vld [vmem:[#allocation34_spill] sm:$0xff] }
 0x3fe   : > { %v2298_v11 = vpop.eup %2297  ;;  %1449 = vadd.xlane.f32.xlu2 %v1448_v35  ;;  %1969 = vmatmul.msk.f32.gmra.mxu0 %vm481_vm0, %v578_v2  ;;  %v3876_v20 = vld [vmem:[#allocation35_spill] sm:$0xff] }
 0x3ff   : > { %1603 = vst [vmem:[%s3156_s23 + $0x1c0] sm:$0xff] %v3529_v26  ;;  %v3540_v0 = vmul.f32 %v2298_v11, %v3344_v53  ;;  %v3543_v6 = vmul.f32 %v2298_v11, %v3348_v59  ;;  %1973 = vmatmul.msk.f32.gmra.mxu1 %vm481_vm0, %v578_v2  ;;  %v581_v53 = vld [vmem:[%s3787_s7 + $0x10] sm:$0xff] }
 0x400   : > { %1604 = vst [vmem:[%s3156_s23 + $0x1c8] sm:$0xff] %v3532_v7 }
 0x401   : > { %1616 = vmatpush.xpose.msrb.mxu0 %v3185_v51  ;;  %1645 = vmatpush.xpose.msrb.mxu1 %v3188_v52  ;;  %1593 = vst [vmem:[%s3156_s23 + $0x170] sm:$0xff] %v3540_v0  ;;  %v3877_v51 = vld [vmem:[#allocation37_spill] sm:$0xff]  ;;  %v3878_v52 = vld [vmem:[#allocation31_spill] sm:$0xff] }
 0x402   : > { %590 = vperm.xlu0 %2130, %v580_v47   ;;  %1594 = vst [vmem:[%s3156_s23 + $0x178] sm:$0xff] %v3543_v6 }
 0x405   : > { %1617 = vmatpush.xpose.msrb.mxu0 %v3212_v55  ;;  %1646 = vmatpush.xpose.msrb.mxu1 %v3876_v20  ;;  %v3881_v55 = vld [vmem:[#allocation28_spill] sm:$0xff] }
 0x406   : > { %v582_v20 = vld [vmem:[%s3787_s7 + $0x18] sm:$0xff] }
 0x409   : > { %1618 = vmatpush.xpose.msrb.mxu0 %v3247_v27  ;;  %1647 = vmatpush.xpose.msrb.mxu1 %v3250_v4  ;;  %v3880_v27 = vld [vmem:[#allocation21_spill] sm:$0xff] }
 0x40a   : > { %v1199_v4 = vsub.f32 %v3881_v55, %v3880_v27 }
 0x40c   : > { %v1299_v23 = vmul.f32 1.442695, %v1199_v4 }
 0x40d   : > { %1619 = vmatpush.xpose.msrb.mxu0 %v3283_v29  ;;  %1648 = vmatpush.xpose.msrb.mxu1 %v3877_v51  ;;  %v3882_v29 = vld [vmem:[#allocation29_spill] sm:$0xff]  ;;  %v2132_v51 = vld [vmem:[#allocation2] ss:$0 sm:$0xff] }
 0x40e   : > { %v1200_v59 = vsub.f32 %v3882_v29, %v3880_v27  ;;  %2299 = vpow2.f32 %v1299_v23 }
 0x410   : > { %v1301_v40 = vmul.f32 1.442695, %v1200_v59 }
 0x411   : > { %1620 = vmatpush.xpose.msrb.mxu0 %v3878_v52  ;;  %1649 = vmatpush.xpose.msrb.mxu1 %v3879_v41 }
 0x412   : > { %2301 = vpow2.f32 %v1301_v40 }
 0x415   : > { %1621 = vmatpush.xpose.msrb.mxu0 %v3331_v48  ;;  %1650 = vmatpush.xpose.msrb.mxu1 %v3334_v1  ;;  %v3883_v48 = vld [vmem:[#allocation30_spill] sm:$0xff]  ;;  %v3884_v1 = vld [vmem:[#allocation24_spill] sm:$0xff] }
 0x416   : > { %595 = vperm.xlu2 %2131, %v581_v53   ;;  %v1195_v49 = vsub.f32 %v3884_v1, %v3883_v48  ;;  %v1196_v45 = vsub.f32 %v3885_v34, %v3883_v48 }
 0x419   : > { %1622 = vmatpush.xpose.msrb.mxu0 %v3351_v24  ;;  %1651 = vmatpush.xpose.msrb.mxu1 %v3354_v39  ;;  %v1291_v24 = vmul.f32 1.442695, %v1195_v49  ;;  %v1293_v39 = vmul.f32 1.442695, %v1196_v45 }
 0x41b   : > { %2303 = vpow2.f32 %v1291_v24 }
 0x41c   : > { %2305 = vpow2.f32 %v1293_v39 }
 0x41d   : > { %1623 = vmatpush.xpose.msrb.mxu0 %v3363_v14  ;;  %1652 = vmatpush.xpose.msrb.mxu1 %v3366_v10  ;;  %v3587_v14 = vpop.eup %2299 }
 0x41e   : > { %v3589_v10 = vpop.eup %2301 }
 0x421   : > { %1624 = vmatpush.xpose.msrb.mxu0 %v3373_v36  ;;  %1653 = vmatpush.xpose.msrb.mxu1 %v3376_v13  ;;  %v3594_v36 = vadd.f32 %v632_v61, %v3422_v3  ;;  %v1409_v13 = vadd.f32 %v3589_v10, %v3587_v14 }
 0x425   : > { %1625 = vmatpush.xpose.msrb.mxu0 %v3383_v18  ;;  %1654 = vmatpush.xpose.msrb.mxu1 %v3386_v19  ;;  %v3886_v18 = vld [vmem:[#allocation36_spill] sm:$0xff]  ;;  %v3887_v19 = vld [vmem:[#allocation26_spill] sm:$0xff] }
 0x426   : > { %v1197_v12 = vsub.f32 %v3887_v19, %v3886_v18  ;;  %v1198_v25 = vsub.f32 %v3888_v33, %v3886_v18 }
 0x428   : > { %v1295_v46 = vmul.f32 1.442695, %v1197_v12  ;;  %v1297_v35 = vmul.f32 1.442695, %v1198_v25  ;;  %v2325_v12 = vld [vmem:[%s2681_s17] sm:$0xff] }
 0x429   : > { %1626 = vmatpush.xpose.msrb.mxu0 %v3393_v15  ;;  %1655 = vmatpush.xpose.msrb.mxu1 %v3396_v50  ;;  %v3607_v15 = vpop.eup %2303 }
 0x42a   : > { %v3609_v50 = vpop.eup %2305  ;;  %2307 = vpow2.f32 %v1295_v46 }
 0x42b   : > { %v1403_v11 = vadd.f32 %v3609_v50, %v3607_v15  ;;  %2309 = vpow2.f32 %v1297_v35 }
 0x42c   : > { %1410 = vadd.xlane.f32.xlu0 %v1409_v13  ;;  %1627 = vmatmul.f32.vlgmr.msrb.gmra.mxu0 %v3594_v36 }
 0x42d   : > { %1656 = vmatmul.f32.vlgmr.msrb.gmra.mxu1 %v3601_v63 }
 0x430   : > { %v3613_v3 = vpop.eup %2307 }
 0x431   : > { %v3615_v47 = vpop.eup %2309 }
 0x432   : > { %v1406_v2 = vadd.f32 %v3615_v47, %v3613_v3 }
 0x434   : > { %1404 = vadd.xlane.f32.xlu0 %v1403_v11 }
 0x43f   : > { %1407 = vadd.xlane.f32.xlu2 %v1406_v2 }
 0x448   : > { %600 = vperm.xlu0 %2130, %v582_v20  }
 0x457   : > { %1731 = vperm.xlu2 %2131, %v2132_v51  }
 0x459   : > { %v1444_v52 = vpop.xlane.xlu2 %1443 }
 0x45a   : > { %2311 = vrcp.f32 %v1444_v52 }
 0x460   : > { %v2312_v41 = vpop.eup %2311 }
 0x461   : > { %v1414_v53 = vpop.xlane.xlu2 %1413  ;;  %v1447_v27 = vpop.xlane.xlu0 %1446  ;;  %v1541_v55 = vmul.f32 %v2312_v41, %v3462_v22  ;;  %v1542_v4 = vmul.f32 %v2312_v41, %v3464_v62 }
 0x462   : > { %2313 = vrcp.f32 %v1414_v53  ;;  %v635_v22 = vpop.f32.mrf.mxu0  ;;  %v664_v62 = vpop.f32.mrf.mxu1 }
 0x463   : > { %2315 = vrcp.f32 %v1447_v27  ;;  %1605 = vst [vmem:[%s3156_s23 + $0x1d0] sm:$0xff] %v1541_v55 }
 0x464   : > { %1606 = vst [vmem:[%s3156_s23 + $0x1d8] sm:$0xff] %v1542_v4 }
 0x468   : > { %v2314_v29 = vpop.eup %2313 }
 0x469   : > { %v2316_v59 = vpop.eup %2315  ;;  %v3627_v23 = vmul.f32 %v2314_v29, %v3476_v58  ;;  %v1522_v1 = vmul.f32 %v2314_v29, %v3480_v17 }
 0x46a   : > { %v1543_v40 = vmul.f32 %v2316_v59, %v3482_v60  ;;  %v1544_v48 = vmul.f32 %v2316_v59, %v3484_v54  ;;  %v638_v60 = vpop.f32.mrf.mxu0  ;;  %v667_v39 = vpop.f32.mrf.mxu1 }
 0x46b   : > { %1585 = vst [vmem:[%s3156_s23 + $0x130] sm:$0xff] %v3627_v23 }
 0x46c   : > { %1607 = vst [vmem:[%s3156_s23 + $0x1e0] sm:$0xff] %v1543_v40 }
 0x46d   : > { %1608 = vst [vmem:[%s3156_s23 + $0x1e8] sm:$0xff] %v1544_v48 }
 0x46e   : > { %1586 = vst [vmem:[%s3156_s23 + $0x138] sm:$0xff] %v1522_v1 }
 0x471   : > { %v1450_v49 = vpop.xlane.xlu2 %1449 }
 0x472   : > { %2317 = vrcp.f32 %v1450_v49 }
 0x474   : > { %v591_v34 = vpop.permute.xlu0 %590 }
 0x475   : > { %v3637_v58 = vadd.f32 %v635_v22, %v591_v34  ;;  %v3639_v45 = vadd.f32 %v664_v62, %v591_v34 }
 0x477   : > { %1630 = vmatmul.f32.gmra.mxu0 %v3637_v58  ;;  %1659 = vmatmul.f32.gmra.mxu1 %v3639_v45 }
 0x478   : > { %v2318_v17 = vpop.eup %2317 }
 0x479   : > { %v1545_v54 = vmul.f32 %v2318_v17, %v3520_v38  ;;  %v1546_v24 = vmul.f32 %v2318_v17, %v3522_v16  ;;  %v596_v61 = vpop.permute.xlu2 %595 }
 0x47a   : > { %v3647_v57 = vadd.f32 %v638_v60, %v596_v61  ;;  %v3649_v13 = vadd.f32 %v667_v39, %v596_v61 }
 0x47b   : > { %1609 = vst [vmem:[%s3156_s23 + $0x1f0] sm:$0xff] %v1545_v54  ;;  %1669 = vmatpush.xpose.msra.mxu0 %v1545_v54  ;;  %1698 = vmatpush.xpose.msra.mxu1 %v1546_v24 }
 0x47c   : > { %1610 = vst [vmem:[%s3156_s23 + $0x1f8] sm:$0xff] %v1546_v24 }
 0x47f   : > { %1633 = vmatmul.f32.gmra.mxu0 %v3647_v57  ;;  %1662 = vmatmul.f32.gmra.mxu1 %v3649_v13 }
 0x480   : > { %1670 = vmatpush.xpose.msra.mxu0 %v1543_v40  ;;  %1699 = vmatpush.xpose.msra.mxu1 %v1544_v48 }
 0x484   : > { %1671 = vmatpush.xpose.msra.mxu0 %v1541_v55  ;;  %1700 = vmatpush.xpose.msra.mxu1 %v1542_v4 }
 0x488   : > { %1672 = vmatpush.xpose.msra.mxu0 %v3529_v26  ;;  %1701 = vmatpush.xpose.msra.mxu1 %v3532_v7 }
 0x48c   : > { %1673 = vmatpush.xpose.msra.mxu0 %v3507_v9  ;;  %1702 = vmatpush.xpose.msra.mxu1 %v3510_v44 }
 0x490   : > { %1674 = vmatpush.xpose.msra.mxu0 %v3491_v8  ;;  %1703 = vmatpush.xpose.msra.mxu1 %v3494_v28  ;;  %v3889_v8 = vld [vmem:[#allocation38_spill] sm:$0xff] }
 0x494   : > { %1675 = vmatpush.xpose.msra.mxu0 %v3469_v56  ;;  %1704 = vmatpush.xpose.msra.mxu1 %v3472_v30 }
 0x498   : > { %1676 = vmatpush.xpose.msra.mxu0 %v3449_v21  ;;  %1705 = vmatpush.xpose.msra.mxu1 %v3452_v32 }
 0x49c   : > { %1677 = vmatpush.xpose.msra.mxu0 %v3540_v0  ;;  %1706 = vmatpush.xpose.msra.mxu1 %v3543_v6 }
 0x49f   : > { %v1411_v9 = vpop.xlane.xlu0 %1410 }
 0x4a0   : > { %1678 = vmatpush.xpose.msra.mxu0 %v3425_v37  ;;  %1707 = vmatpush.xpose.msra.mxu1 %v3428_v43  ;;  %2319 = vrcp.f32 %v1411_v9  ;;  %v641_v37 = vpop.f32.mrf.mxu0  ;;  %v670_v43 = vpop.f32.mrf.mxu1 }
 0x4a4   : > { %1679 = vmatpush.xpose.msra.mxu0 %v3413_v31  ;;  %1708 = vmatpush.xpose.msra.mxu1 %v3416_v5 }
 0x4a6   : > { %v2320_v56 = vpop.eup %2319 }
 0x4a7   : > { %v1405_v21 = vpop.xlane.xlu0 %1404  ;;  %v1519_v32 = vmul.f32 %v2320_v56, %v3587_v14  ;;  %v1520_v30 = vmul.f32 %v2320_v56, %v3589_v10 }
 0x4a8   : > { %1680 = vmatpush.xpose.msra.mxu0 %v3403_v42  ;;  %1709 = vmatpush.xpose.msra.mxu1 %v3889_v8  ;;  %2321 = vrcp.f32 %v1405_v21 }
 0x4a9   : > { %1583 = vst [vmem:[%s3156_s23 + $0x120] sm:$0xff] %v1519_v32  ;;  %v1628_v44 = vpop.f32.mrf.mxu0 }
 0x4aa   : > { %1584 = vst [vmem:[%s3156_s23 + $0x128] sm:$0xff] %v1520_v30  ;;  %v1657_v38 = vpop.f32.mrf.mxu1 }
 0x4ab   : > { %v1658_v26 = vadd.f32 %v1657_v38, %v1628_v44 }
 0x4ac   : > { %1681 = vmatpush.xpose.msra.mxu0 %v3627_v23  ;;  %1710 = vmatpush.xpose.msra.mxu1 %v1522_v1 }
 0x4ae   : > { %v2322_v31 = vpop.eup %2321 }
 0x4af   : > { %v1515_v5 = vmul.f32 %v2322_v31, %v3607_v15  ;;  %v1516_v28 = vmul.f32 %v2322_v31, %v3609_v50 }
 0x4b0   : > { %1682 = vmatpush.xpose.msra.mxu0 %v1519_v32  ;;  %1711 = vmatpush.xpose.msra.mxu1 %v1520_v30 }
 0x4b1   : > { %1579 = vst [vmem:[%s3156_s23 + $0x100] sm:$0xff] %v1515_v5 }
 0x4b2   : > { %v1408_v42 = vpop.xlane.xlu2 %1407  ;;  %1580 = vst [vmem:[%s3156_s23 + $0x108] sm:$0xff] %v1516_v28 }
 0x4b3   : > { %2323 = vrcp.f32 %v1408_v42 }
 0x4b9   : > { %v2324_v16 = vpop.eup %2323 }
 0x4ba   : > { %v3680_v7 = vpop.permute.xlu2 %1731  ;;  %v601_v0 = vpop.permute.xlu0 %600  ;;  %v1517_v6 = vmul.f32 %v2324_v16, %v3613_v3  ;;  %v1518_v14 = vmul.f32 %v2324_v16, %v3615_v47 }
 0x4bb   : > { %v1734_v10 = vmul.f32 %v3680_v7, %v1658_v26  ;;  %v642_v18 = vadd.f32 %v641_v37, %v601_v0  ;;  %v671_v19 = vadd.f32 %v670_v43, %v601_v0 }
 0x4bc   : > { %1581 = vst [vmem:[%s3156_s23 + $0x110] sm:$0xff] %v1517_v6  ;;  %1683 = vmatpush.xpose.msra.mxu0 %v1517_v6  ;;  %1712 = vmatpush.xpose.msra.mxu1 %v1518_v14 }
 0x4bd   : > { %v1742_v33 = vadd.f32 %v2325_v12, %v1734_v10  ;;  %1582 = vst [vmem:[%s3156_s23 + $0x118] sm:$0xff] %v1518_v14  ;;  %1636 = vmatmul.f32.gmra.mxu0 %v642_v18  ;;  %1665 = vmatmul.f32.gmra.mxu1 %v671_v19 }
 0x4bf   : > { %1750 = vst [vmem:[%s3689_s24] sm:$0xff] %v1742_v33 }
 0x4c0   : > { %1684 = vmatpush.xpose.msra.mxu0 %v1515_v5  ;;  %1713 = vmatpush.xpose.msra.mxu1 %v1516_v28 }
 0x4c5   : > { %1685 = vmatmul.f32.vlgmr.msra.gmra.mxu0 %v3594_v36  ;;  %1714 = vmatmul.f32.vlgmr.msra.gmra.mxu1 %v3601_v63 }
 0x4cd   : > { %1688 = vmatmul.f32.gmra.mxu0 %v3637_v58  ;;  %1717 = vmatmul.f32.gmra.mxu1 %v3639_v45 }
 0x4d5   : > { %1691 = vmatmul.f32.gmra.mxu0 %v3647_v57  ;;  %1720 = vmatmul.f32.gmra.mxu1 %v3649_v13 }
 0x4dd   : > { %1694 = vmatmul.f32.gmra.mxu0 %v642_v18  ;;  %1723 = vmatmul.f32.gmra.mxu1 %v671_v19 }
 0x4de   : > { %2420 = shalt.err (!%p2417_p13)
}
 0x4df   : > { %s2516_s21 = smov 256   ;;  %s2517_s28 = smov 16   ;;  %v2326_v50 = vld [vmem:[%s2681_s17 + $0x10] sm:$0xff]  ;;  %v2327_v2 = vld [vmem:[%s2681_s17 + $0x20] sm:$0xff]  ;;  %v2329_v40 = vld [vmem:[%s2681_s17 + $0x8] sm:$0xff] }
 0x4e0   : > { %2057 = dma.vmem_to_hbm [thread:$0]  (%p2627_p9), %s1799_s12, 8192, %s1801_s26, %s1764_s29, %s2516_s21, %s2516_s21, %s2517_s28  }
 0x4e1   : > { %v2328_v27 = vld [vmem:[%s2681_s17 + $0x30] sm:$0xff]  ;;  %v2330_v34 = vld [vmem:[%s2681_s17 + $0x18] sm:$0xff]  ;;  %s2050_s12 = sshll.u32 %s2503_s18, 6  ;;  %v2331_v24 = vld [vmem:[%s2681_s17 + $0x28] sm:$0xff]  ;;  %s1778_s26 = sshll.u32 %s3689_s24, 4  ;;  %s1779_s26 = int_to_ptr.vmem [resolvable:$true] %s1778_s26 }
 0x4e2   : > { %s1777_s22 = scalar_lea.hbm %s3789_s9, %s2050_s12  ;;  %v2332_v56 = vld [vmem:[%s2681_s17 + $0x38] sm:$0xff]  ;;  %s1759_s18 = scalar_lea.sflag [#allocation5], %s2666_s15 }
 0x4e3   : > { %s1780_s29 = sshll.u32 %s1777_s22, 4  ;;  %s2441_s14 = scalar_lea.hbm %s3789_s9, 128  ;;  %s1781_s29 = int_to_ptr.hbm [resolvable:$true] %s1780_s29 }
 0x4e4   : > { %s2435_s30 = sshra.s32 %s1781_s29, 4  ;;  %s2436_s30 = int_to_ptr.hbm [resolvable:$true] %s2435_s30 }
 0x4e5   : > { %s2437_s11 = scalar_lea.hbm %s2436_s30, 64  ;;  %p2442_p3 = scmp.lt.s32.totalorder %s2436_s30, %s3789_s9 }
 0x4e6   : > { %p2438_p0 = scmp.ne.s32.totalorder %s2436_s30, %s2437_s11  ;;  %p2443_p4 = scmp.lt.s32.totalorder %s2441_s14, %s2437_s11 }
 0x4e8   : > { %p2439_p1 = pnand %p2438_p0, %p2627_p9  ;;  %p2444_p5 = por %p2443_p4, %p2442_p3 }
 0x4ea   : > { %p2440_p2 = pneg %p2439_p1 }
 0x4ec   : > { %p2445_p6 = pnand %p2444_p5, %p2440_p2 }
 0x4f4   : > { %v1631_v36 = vpop.f32.mrf.mxu0  ;;  %v1660_v63 = vpop.f32.mrf.mxu1 }
 0x4f5   : > { %v1661_v25 = vadd.f32 %v1660_v63, %v1631_v36 }
 0x4f7   : > { %v1736_v15 = vmul.f32 %v3680_v7, %v1661_v25 }
 0x4f9   : > { %v1744_v46 = vadd.f32 %v2326_v50, %v1736_v15 }
 0x4fb   : > { %1752 = vst [vmem:[%s3689_s24 + $0x10] sm:$0xff] %v1744_v46 }
 0x4fc   : > { %v1634_v35 = vpop.f32.mrf.mxu0  ;;  %v1663_v11 = vpop.f32.mrf.mxu1 }
 0x4fd   : > { %v1664_v3 = vadd.f32 %v1663_v11, %v1634_v35 }
 0x4ff   : > { %v1738_v47 = vmul.f32 %v3680_v7, %v1664_v3 }
 0x501   : > { %v1746_v20 = vadd.f32 %v2327_v2, %v1738_v47 }
 0x503   : > { %1754 = vst [vmem:[%s3689_s24 + $0x20] sm:$0xff] %v1746_v20 }
 0x53a   : > { %v1637_v51 = vpop.f32.mrf.mxu0  ;;  %v1666_v52 = vpop.f32.mrf.mxu1 }
 0x53b   : > { %v1667_v41 = vadd.f32 %v1666_v52, %v1637_v51 }
 0x53d   : > { %v1740_v53 = vmul.f32 %v3680_v7, %v1667_v41 }
 0x53f   : > { %v1748_v55 = vadd.f32 %v2328_v27, %v1740_v53 }
 0x541   : > { %1756 = vst [vmem:[%s3689_s24 + $0x30] sm:$0xff] %v1748_v55 }
 0x542   : > { %v1686_v4 = vpop.f32.mrf.mxu0  ;;  %v1715_v29 = vpop.f32.mrf.mxu1 }
 0x543   : > { %v1716_v59 = vadd.f32 %v1715_v29, %v1686_v4 }
 0x545   : > { %v1735_v23 = vmul.f32 %v3680_v7, %v1716_v59 }
 0x547   : > { %v1743_v48 = vadd.f32 %v2329_v40, %v1735_v23 }
 0x549   : > { %1751 = vst [vmem:[%s3689_s24 + $0x8] sm:$0xff] %v1743_v48 }
 0x54a   : > { %v1689_v1 = vpop.f32.mrf.mxu0  ;;  %v1718_v22 = vpop.f32.mrf.mxu1 }
 0x54b   : > { %v1719_v62 = vadd.f32 %v1718_v22, %v1689_v1 }
 0x54d   : > { %v1737_v49 = vmul.f32 %v3680_v7, %v1719_v62 }
 0x54f   : > { %v1745_v58 = vadd.f32 %v2330_v34, %v1737_v49 }
 0x551   : > { %1753 = vst [vmem:[%s3689_s24 + $0x18] sm:$0xff] %v1745_v58 }
 0x552   : > { %v1692_v45 = vpop.f32.mrf.mxu0  ;;  %v1721_v17 = vpop.f32.mrf.mxu1 }
 0x553   : > { %v1722_v60 = vadd.f32 %v1721_v17, %v1692_v45 }
 0x555   : > { %v1739_v54 = vmul.f32 %v3680_v7, %v1722_v60 }
 0x557   : > { %v1747_v39 = vadd.f32 %v2331_v24, %v1739_v54 }
 0x559   : > { %1755 = vst [vmem:[%s3689_s24 + $0x28] sm:$0xff] %v1747_v39 }
 0x55a   : > { %v1695_v61 = vpop.f32.mrf.mxu0  ;;  %v1724_v57 = vpop.f32.mrf.mxu1 }
 0x55b   : > { %v1725_v13 = vadd.f32 %v1724_v57, %v1695_v61 }
 0x55d   : > { %v1741_v9 = vmul.f32 %v3680_v7, %v1725_v13 }
 0x55f   : > { %v1749_v21 = vadd.f32 %v2332_v56, %v1741_v9 }
 0x561   : > { %1757 = vst [vmem:[%s3689_s24 + $0x38] sm:$0xff] %v1749_v21 }
 0x562   : > { %2448 = shalt.err (!%p2445_p6)
}
 0x563   : > { %2056 = dma.vmem_to_hbm [thread:$0]  (%p2627_p9), %s1779_s26, 1024, %s1781_s29, %s1759_s18, %s2516_s21, %s2516_s21, %s2517_s28  }
 0x564 PF: > { %s3890_s15 = sld [smem:[#allocation15_spill]]  ;;  %p2068_p7 = pnand %p1950_p12, %p2634_p11 }
 0x566   : > { %p2069_p8 = pneg %p2068_p7 }
 0x56a   : > { %s1815_s24 = sand.u32 1, %s3890_s15  }
 0x56b   : > { %s1816_s12 = scalar_lea.sflag [#allocation5], %s1815_s24 }
 0x56c   : > { %2482 = dma.done.wait (%p2069_p8), %s1816_s12, 1024  }
 0x56d   : > { %2484 = vsyncadd (%p2069_p8), %s1816_s12, 4294966272  ;;  %s1826_s0 = scalar_lea.sflag [#allocation10], %s1815_s24 }
 0x56e   : > { %2486 = dma.done.wait (%p2069_p8), %s1826_s0, 8192  }
 0x56f   : > { %2488 = vsyncadd (%p2069_p8), %s1826_s0, 4294959104  ;;  %s35_s8 = sadd.s32 1, %s2511_s8   ;;  %s3892_s27 = sld [smem:[#allocation16_spill]] }
 0x570   : > { %p32_p10 = scmp.ge.s32.totalorder %s35_s8, 4   ;;  %s3893_s17 = sld [smem:[#allocation19_spill]] }
 0x571   : > { %s3894_s18 = sld [smem:[#allocation17_spill]]  ;;  %s3896_s15 = smov %s2495_s16 }
 0x572   : > { %s3895_s19 = sld [smem:[#allocation18_spill]]  ;;  %34 = sbr.rel (!%p32_p10) target bundleno = 13 (0xd), region = 131 }
 0x575   : > { %s3897_s16 = smov %s3892_s27 }
 0x577   :  { %1832 = vsyncpa [#allocation4], 1 }
 0x578   :  { %1834 = vsyncpa [#allocation4 + $0x1], 1 }
 0x579   :  { %1835 = vsyncpa [#allocation7], 1 }
 0x57a   :  { %1837 = vsyncpa [#allocation7 + $0x1], 1 }
 0x57b   :  { %1838 = vsyncpa [#allocation5], 1 }
 0x57c   :  { %1840 = vsyncpa [#allocation5 + $0x1], 1 }
 0x57d   :  { %1841 = vsyncpa [#allocation10], 1 }
 0x57e   :  { %1843 = vsyncpa [#allocation10 + $0x1], 1 }

</bundles_post_ra>
